<compile_context>
chip_gen: v6e
topology: v6e:2x2x1
jax: 0.10.0
libtpu: 0.0.40
codegen_flags: <defaults>
</compile_context>

<pallas_src>
import jax
import jax.numpy as jnp
from jax.experimental import pallas as pl
from jax.experimental.pallas import tpu as pltpu

INPUT_SIZE = 10
HIDDEN_SIZE = 20
OUTPUT_SIZE = 2
GATE_PAD = 128  # each gate block padded to one full lane group


def _gru_kernel(x_ref, wix_ref, bx_ref, whh_ref, bhn_ref, wfc_ref, bfc_ref,
                out_ref):
    GP = GATE_PAD
    B = out_ref.shape[0]
    T = x_ref.shape[0] // B  # x is time-major (T*B, D_in); all static

    # ---- Input projections for all T steps: ONE matmul, off the serial chain.
    # gx[t*B:(t+1)*B, :] are the pre-activations [r | z | n] for step t
    # (r/z input+hidden biases and b_in already folded in).
    gx = jnp.dot(x_ref[...], wix_ref[...],
                 preferred_element_type=jnp.float32) + bx_ref[...]  # (T*B, 3*GP)

    whh = whh_ref[...]                                   # (GP, 3*GP) bf16, invariant
    bhn = jnp.broadcast_to(bhn_ref[...], (B, GP))        # hoisted b_hn broadcast

    h = jnp.zeros((B, GP), jnp.float32)                  # lane-padded hidden state

    # T is a static Python int -> fully unrolled at trace time.
    # TODO(synk): switch to lax.fori_loop(unroll=4..8) if T is scaled beyond ~32.
    for t in range(T):
        gx_t = gx[t * B:(t + 1) * B, :]                  # static slice, no h-dep
        gh = jnp.dot(h.astype(jnp.bfloat16), whh,
                     preferred_element_type=jnp.float32)  # (B, 3*GP)
        # r and z share one EUP pass over a lane-aligned (B, 2*GP) slab.
        rz = jax.nn.sigmoid(gx_t[:, :2 * GP] + gh[:, :2 * GP])
        r = rz[:, :GP]
        z = rz[:, GP:]
        # n = tanh(W_in x + b_in + r * (W_hn h + b_hn))
        n = jnp.tanh(gx_t[:, 2 * GP:] + r * (gh[:, 2 * GP:] + bhn))
        # (1 - z) * n + z * h  ==  n + z * (h - n)
        h = n + z * (h - n)

    # Final fully-connected layer on the last hidden state (runs once).
    out_ref[...] = (jnp.dot(h.astype(jnp.bfloat16), wfc_ref[...],
                            preferred_element_type=jnp.float32)
                    + bfc_ref[...]).astype(out_ref.dtype)


def simple_gru_forward(x, params):
    """x: (B, T, D_in) float32 -> (B, OUTPUT_SIZE) float32."""
    B, T, D_in = x.shape
    H, O, GP = HIDDEN_SIZE, OUTPUT_SIZE, GATE_PAD

    w_ih, w_hh = params["w_ih"], params["w_hh"]          # (3H, D_in), (3H, H)
    b_ih, b_hh = params["b_ih"], params["b_hh"]          # (3H,), (3H,)

    def pad_cols(w):   # (rows, H) -> (rows, GP)
        return jnp.pad(w, ((0, 0), (0, GP - H)))

    def pad_bias(b):   # (H,) -> (GP,)
        return jnp.pad(b, (0, GP - H))

    # Input-projection weight (D_in, 3*GP), gate blocks [r | z | n] lane-aligned.
    wix = jnp.concatenate(
        [pad_cols(w_ih[:H].T), pad_cols(w_ih[H:2 * H].T), pad_cols(w_ih[2 * H:].T)],
        axis=1).astype(jnp.bfloat16)
    # Bias folded into the input projection: r/z get (b_i + b_h); n gets b_in only
    # (b_hn must stay inside the r * (...) term).
    bx = jnp.concatenate(
        [pad_bias(b_ih[:H] + b_hh[:H]),
         pad_bias(b_ih[H:2 * H] + b_hh[H:2 * H]),
         pad_bias(b_ih[2 * H:])]).reshape(1, 3 * GP)

    # Recurrent weight (GP, 3*GP): hidden state is lane-padded, so rows H:GP = 0.
    whh = jnp.concatenate(
        [pad_cols(w_hh[:H].T), pad_cols(w_hh[H:2 * H].T), pad_cols(w_hh[2 * H:].T)],
        axis=1)
    whh = jnp.pad(whh, ((0, GP - H), (0, 0))).astype(jnp.bfloat16)
    bhn = pad_bias(b_hh[2 * H:]).reshape(1, GP)

    wfc = jnp.pad(params["w_fc"].T, ((0, GP - H), (0, 0))).astype(jnp.bfloat16)
    bfc = params["b_fc"].reshape(1, O)

    # Time-major flatten: rows t*B:(t+1)*B belong to step t -> static per-step
    # slices inside the kernel, no in-loop concat with the hidden state.
    x_tb = jnp.transpose(x, (1, 0, 2)).reshape(T * B, D_in).astype(jnp.bfloat16)

    # Single invocation, no grid: at B=2 a grid would be pure overhead.
    # TODO(synk): when B is scaled up, add a ("parallel",) batch grid axis
    # (TILE_B BlockSpecs) so the second v7x TensorCore is used.
    vmem = pl.BlockSpec(memory_space=pltpu.MemorySpace.VMEM)
    return pl.pallas_call(
        _gru_kernel,
        out_shape=jax.ShapeDtypeStruct((B, O), jnp.float32),
        in_specs=[vmem] * 7,
        out_specs=vmem,
    )(x_tb, wix, bx, whh, bhn, wfc, bfc)


def init_params(key):
    """Deterministic init matching the PyTorch module's parameter shapes."""
    H, D, O = HIDDEN_SIZE, INPUT_SIZE, OUTPUT_SIZE
    ks = jax.random.split(key, 6)
    s = 1.0 / jnp.sqrt(H)
    return {
        "w_ih": jax.random.uniform(ks[0], (3 * H, D), jnp.float32, -s, s),
        "w_hh": jax.random.uniform(ks[1], (3 * H, H), jnp.float32, -s, s),
        "b_ih": jax.random.uniform(ks[2], (3 * H,), jnp.float32, -s, s),
        "b_hh": jax.random.uniform(ks[3], (3 * H,), jnp.float32, -s, s),
        "w_fc": jax.random.uniform(ks[4], (O, H), jnp.float32, -s, s),
        "b_fc": jax.random.uniform(ks[5], (O,), jnp.float32, -s, s),
    }


def reference_forward(x, params):
    """Pure-JAX f32 reference of the PyTorch GRU + Linear forward."""
    H = HIDDEN_SIZE
    B = x.shape[0]
    wih, whh = params["w_ih"], params["w_hh"]
    bih, bhh = params["b_ih"], params["b_hh"]

    def step(h, x_t):
        gi = x_t @ wih.T + bih
        gh = h @ whh.T + bhh
        r = jax.nn.sigmoid(gi[:, :H] + gh[:, :H])
        z = jax.nn.sigmoid(gi[:, H:2 * H] + gh[:, H:2 * H])
        n = jnp.tanh(gi[:, 2 * H:] + r * gh[:, 2 * H:])
        return (1.0 - z) * n + z * h, None

    h0 = jnp.zeros((B, H), jnp.float32)
    h_last, _ = jax.lax.scan(step, h0, jnp.transpose(x, (1, 0, 2)))
    return h_last @ params["w_fc"].T + params["b_fc"]


if __name__ == "__main__":
    key = jax.random.PRNGKey(0)
    k_x, k_p = jax.random.split(key)

    B, T = 2, 8
    x = jax.random.normal(k_x, (B, T, INPUT_SIZE), jnp.float32)
    params = init_params(k_p)

    y = simple_gru_forward(x, params)
    y = jax.block_until_ready(y)

    y_ref = reference_forward(x, params)
    assert y.shape == (B, OUTPUT_SIZE)
    # bf16 MXU operands in the recurrence -> looser tolerance vs. the f32 reference.
    assert jnp.allclose(y, y_ref, atol=5e-2, rtol=5e-2), (y, y_ref)

    print("KERNEL_OK")
</pallas_src>

<mosaic_0001>
module attributes {stable_mosaic.version = 11 : i64} {
  func.func @_gru_kernel(%arg0: memref<16x10xbf16, #tpu.memory_space<vmem>>, %arg1: memref<10x384xbf16, #tpu.memory_space<vmem>>, %arg2: memref<1x384xf32, #tpu.memory_space<vmem>>, %arg3: memref<128x384xbf16, #tpu.memory_space<vmem>>, %arg4: memref<1x128xf32, #tpu.memory_space<vmem>>, %arg5: memref<128x2xbf16, #tpu.memory_space<vmem>>, %arg6: memref<1x2xf32, #tpu.memory_space<vmem>>, %arg7: memref<2x2xf32, #tpu.memory_space<vmem>>) attributes {dimension_semantics = [], scalar_prefetch = 0 : i64, scratch_operands = 0 : i64, tpu.core_type = #tpu.core_type<tc>} {
    %c0 = arith.constant 0 : index
    %c0_0 = arith.constant 0 : index
    %0 = vector.load %arg0[%c0, %c0_0] : memref<16x10xbf16, #tpu.memory_space<vmem>>, vector<16x10xbf16>
    %c0_1 = arith.constant 0 : index
    %c0_2 = arith.constant 0 : index
    %1 = vector.load %arg1[%c0_1, %c0_2] : memref<10x384xbf16, #tpu.memory_space<vmem>>, vector<10x384xbf16>
    %cst = arith.constant dense<0.000000e+00> : vector<16x384xf32>
    %2 = tpu.matmul %0, %1, %cst {dimension_numbers = #tpu.dot_dimension_numbers<[1], [0], [0], [1], [0, 0, 1, 1], [], []>} : vector<16x10xbf16>, vector<10x384xbf16>, vector<16x384xf32> -> vector<16x384xf32>
    %c0_3 = arith.constant 0 : index
    %c0_4 = arith.constant 0 : index
    %3 = vector.load %arg2[%c0_3, %c0_4] : memref<1x384xf32, #tpu.memory_space<vmem>>, vector<1x384xf32>
    %4 = vector.broadcast %3 : vector<1x384xf32> to vector<16x384xf32>
    %5 = arith.addf %2, %4 : vector<16x384xf32>
    %c0_5 = arith.constant 0 : index
    %c0_6 = arith.constant 0 : index
    %6 = vector.load %arg3[%c0_5, %c0_6] : memref<128x384xbf16, #tpu.memory_space<vmem>>, vector<128x384xbf16>
    %c0_7 = arith.constant 0 : index
    %c0_8 = arith.constant 0 : index
    %7 = vector.load %arg4[%c0_7, %c0_8] : memref<1x128xf32, #tpu.memory_space<vmem>>, vector<1x128xf32>
    %8 = vector.shape_cast %7 : vector<1x128xf32> to vector<1x128xf32>
    %9 = vector.broadcast %8 : vector<1x128xf32> to vector<2x128xf32>
    %cst_9 = arith.constant 0.000000e+00 : f32
    %10 = vector.broadcast %cst_9 : f32 to vector<2x128xf32>
    %11 = vector.extract_strided_slice %5 {offsets = [0, 0], sizes = [2, 384], strides = [1, 1]} : vector<16x384xf32> to vector<2x384xf32>
    %12 = arith.truncf %10 : vector<2x128xf32> to vector<2x128xbf16>
    %cst_10 = arith.constant dense<0.000000e+00> : vector<2x384xf32>
    %13 = tpu.matmul %12, %6, %cst_10 {dimension_numbers = #tpu.dot_dimension_numbers<[1], [0], [0], [1], [0, 0, 1, 1], [], []>} : vector<2x128xbf16>, vector<128x384xbf16>, vector<2x384xf32> -> vector<2x384xf32>
    %14 = vector.extract_strided_slice %11 {offsets = [0, 0], sizes = [2, 256], strides = [1, 1]} : vector<2x384xf32> to vector<2x256xf32>
    %15 = vector.extract_strided_slice %13 {offsets = [0, 0], sizes = [2, 256], strides = [1, 1]} : vector<2x384xf32> to vector<2x256xf32>
    %16 = arith.addf %14, %15 : vector<2x256xf32>
    %17 = arith.negf %16 : vector<2x256xf32>
    %18 = math.exp %17 : vector<2x256xf32>
    %cst_11 = arith.constant 1.000000e+00 : f32
    %19 = vector.broadcast %cst_11 : f32 to vector<2x256xf32>
    %20 = arith.addf %19, %18 : vector<2x256xf32>
    %21 = arith.divf %19, %20 : vector<2x256xf32>
    %22 = vector.extract_strided_slice %21 {offsets = [0, 0], sizes = [2, 128], strides = [1, 1]} : vector<2x256xf32> to vector<2x128xf32>
    %23 = vector.extract_strided_slice %21 {offsets = [0, 128], sizes = [2, 128], strides = [1, 1]} : vector<2x256xf32> to vector<2x128xf32>
    %24 = vector.extract_strided_slice %11 {offsets = [0, 256], sizes = [2, 128], strides = [1, 1]} : vector<2x384xf32> to vector<2x128xf32>
    %25 = vector.extract_strided_slice %13 {offsets = [0, 256], sizes = [2, 128], strides = [1, 1]} : vector<2x384xf32> to vector<2x128xf32>
    %26 = arith.addf %25, %9 : vector<2x128xf32>
    %27 = arith.mulf %22, %26 : vector<2x128xf32>
    %28 = arith.addf %24, %27 : vector<2x128xf32>
    %29 = math.tanh %28 : vector<2x128xf32>
    %30 = arith.subf %10, %29 : vector<2x128xf32>
    %31 = arith.mulf %23, %30 : vector<2x128xf32>
    %32 = arith.addf %29, %31 : vector<2x128xf32>
    %33 = vector.extract_strided_slice %5 {offsets = [2, 0], sizes = [2, 384], strides = [1, 1]} : vector<16x384xf32> to vector<2x384xf32>
    %34 = arith.truncf %32 : vector<2x128xf32> to vector<2x128xbf16>
    %cst_12 = arith.constant dense<0.000000e+00> : vector<2x384xf32>
    %35 = tpu.matmul %34, %6, %cst_12 {dimension_numbers = #tpu.dot_dimension_numbers<[1], [0], [0], [1], [0, 0, 1, 1], [], []>} : vector<2x128xbf16>, vector<128x384xbf16>, vector<2x384xf32> -> vector<2x384xf32>
    %36 = vector.extract_strided_slice %33 {offsets = [0, 0], sizes = [2, 256], strides = [1, 1]} : vector<2x384xf32> to vector<2x256xf32>
    %37 = vector.extract_strided_slice %35 {offsets = [0, 0], sizes = [2, 256], strides = [1, 1]} : vector<2x384xf32> to vector<2x256xf32>
    %38 = arith.addf %36, %37 : vector<2x256xf32>
    %39 = arith.negf %38 : vector<2x256xf32>
    %40 = math.exp %39 : vector<2x256xf32>
    %cst_13 = arith.constant 1.000000e+00 : f32
    %41 = vector.broadcast %cst_13 : f32 to vector<2x256xf32>
    %42 = arith.addf %41, %40 : vector<2x256xf32>
    %43 = arith.divf %41, %42 : vector<2x256xf32>
    %44 = vector.extract_strided_slice %43 {offsets = [0, 0], sizes = [2, 128], strides = [1, 1]} : vector<2x256xf32> to vector<2x128xf32>
    %45 = vector.extract_strided_slice %43 {offsets = [0, 128], sizes = [2, 128], strides = [1, 1]} : vector<2x256xf32> to vector<2x128xf32>
    %46 = vector.extract_strided_slice %33 {offsets = [0, 256], sizes = [2, 128], strides = [1, 1]} : vector<2x384xf32> to vector<2x128xf32>
    %47 = vector.extract_strided_slice %35 {offsets = [0, 256], sizes = [2, 128], strides = [1, 1]} : vector<2x384xf32> to vector<2x128xf32>
    %48 = arith.addf %47, %9 : vector<2x128xf32>
    %49 = arith.mulf %44, %48 : vector<2x128xf32>
    %50 = arith.addf %46, %49 : vector<2x128xf32>
    %51 = math.tanh %50 : vector<2x128xf32>
    %52 = arith.subf %32, %51 : vector<2x128xf32>
    %53 = arith.mulf %45, %52 : vector<2x128xf32>
    %54 = arith.addf %51, %53 : vector<2x128xf32>
    %55 = vector.extract_strided_slice %5 {offsets = [4, 0], sizes = [2, 384], strides = [1, 1]} : vector<16x384xf32> to vector<2x384xf32>
    %56 = arith.truncf %54 : vector<2x128xf32> to vector<2x128xbf16>
    %cst_14 = arith.constant dense<0.000000e+00> : vector<2x384xf32>
    %57 = tpu.matmul %56, %6, %cst_14 {dimension_numbers = #tpu.dot_dimension_numbers<[1], [0], [0], [1], [0, 0, 1, 1], [], []>} : vector<2x128xbf16>, vector<128x384xbf16>, vector<2x384xf32> -> vector<2x384xf32>
    %58 = vector.extract_strided_slice %55 {offsets = [0, 0], sizes = [2, 256], strides = [1, 1]} : vector<2x384xf32> to vector<2x256xf32>
    %59 = vector.extract_strided_slice %57 {offsets = [0, 0], sizes = [2, 256], strides = [1, 1]} : vector<2x384xf32> to vector<2x256xf32>
    %60 = arith.addf %58, %59 : vector<2x256xf32>
    %61 = arith.negf %60 : vector<2x256xf32>
    %62 = math.exp %61 : vector<2x256xf32>
    %cst_15 = arith.constant 1.000000e+00 : f32
    %63 = vector.broadcast %cst_15 : f32 to vector<2x256xf32>
    %64 = arith.addf %63, %62 : vector<2x256xf32>
    %65 = arith.divf %63, %64 : vector<2x256xf32>
    %66 = vector.extract_strided_slice %65 {offsets = [0, 0], sizes = [2, 128], strides = [1, 1]} : vector<2x256xf32> to vector<2x128xf32>
    %67 = vector.extract_strided_slice %65 {offsets = [0, 128], sizes = [2, 128], strides = [1, 1]} : vector<2x256xf32> to vector<2x128xf32>
    %68 = vector.extract_strided_slice %55 {offsets = [0, 256], sizes = [2, 128], strides = [1, 1]} : vector<2x384xf32> to vector<2x128xf32>
    %69 = vector.extract_strided_slice %57 {offsets = [0, 256], sizes = [2, 128], strides = [1, 1]} : vector<2x384xf32> to vector<2x128xf32>
    %70 = arith.addf %69, %9 : vector<2x128xf32>
    %71 = arith.mulf %66, %70 : vector<2x128xf32>
    %72 = arith.addf %68, %71 : vector<2x128xf32>
    %73 = math.tanh %72 : vector<2x128xf32>
    %74 = arith.subf %54, %73 : vector<2x128xf32>
    %75 = arith.mulf %67, %74 : vector<2x128xf32>
    %76 = arith.addf %73, %75 : vector<2x128xf32>
    %77 = vector.extract_strided_slice %5 {offsets = [6, 0], sizes = [2, 384], strides = [1, 1]} : vector<16x384xf32> to vector<2x384xf32>
    %78 = arith.truncf %76 : vector<2x128xf32> to vector<2x128xbf16>
    %cst_16 = arith.constant dense<0.000000e+00> : vector<2x384xf32>
    %79 = tpu.matmul %78, %6, %cst_16 {dimension_numbers = #tpu.dot_dimension_numbers<[1], [0], [0], [1], [0, 0, 1, 1], [], []>} : vector<2x128xbf16>, vector<128x384xbf16>, vector<2x384xf32> -> vector<2x384xf32>
    %80 = vector.extract_strided_slice %77 {offsets = [0, 0], sizes = [2, 256], strides = [1, 1]} : vector<2x384xf32> to vector<2x256xf32>
    %81 = vector.extract_strided_slice %79 {offsets = [0, 0], sizes = [2, 256], strides = [1, 1]} : vector<2x384xf32> to vector<2x256xf32>
    %82 = arith.addf %80, %81 : vector<2x256xf32>
    %83 = arith.negf %82 : vector<2x256xf32>
    %84 = math.exp %83 : vector<2x256xf32>
    %cst_17 = arith.constant 1.000000e+00 : f32
    %85 = vector.broadcast %cst_17 : f32 to vector<2x256xf32>
    %86 = arith.addf %85, %84 : vector<2x256xf32>
    %87 = arith.divf %85, %86 : vector<2x256xf32>
    %88 = vector.extract_strided_slice %87 {offsets = [0, 0], sizes = [2, 128], strides = [1, 1]} : vector<2x256xf32> to vector<2x128xf32>
    %89 = vector.extract_strided_slice %87 {offsets = [0, 128], sizes = [2, 128], strides = [1, 1]} : vector<2x256xf32> to vector<2x128xf32>
    %90 = vector.extract_strided_slice %77 {offsets = [0, 256], sizes = [2, 128], strides = [1, 1]} : vector<2x384xf32> to vector<2x128xf32>
    %91 = vector.extract_strided_slice %79 {offsets = [0, 256], sizes = [2, 128], strides = [1, 1]} : vector<2x384xf32> to vector<2x128xf32>
    %92 = arith.addf %91, %9 : vector<2x128xf32>
    %93 = arith.mulf %88, %92 : vector<2x128xf32>
    %94 = arith.addf %90, %93 : vector<2x128xf32>
    %95 = math.tanh %94 : vector<2x128xf32>
    %96 = arith.subf %76, %95 : vector<2x128xf32>
    %97 = arith.mulf %89, %96 : vector<2x128xf32>
    %98 = arith.addf %95, %97 : vector<2x128xf32>
    %99 = vector.extract_strided_slice %5 {offsets = [8, 0], sizes = [2, 384], strides = [1, 1]} : vector<16x384xf32> to vector<2x384xf32>
    %100 = arith.truncf %98 : vector<2x128xf32> to vector<2x128xbf16>
    %cst_18 = arith.constant dense<0.000000e+00> : vector<2x384xf32>
    %101 = tpu.matmul %100, %6, %cst_18 {dimension_numbers = #tpu.dot_dimension_numbers<[1], [0], [0], [1], [0, 0, 1, 1], [], []>} : vector<2x128xbf16>, vector<128x384xbf16>, vector<2x384xf32> -> vector<2x384xf32>
    %102 = vector.extract_strided_slice %99 {offsets = [0, 0], sizes = [2, 256], strides = [1, 1]} : vector<2x384xf32> to vector<2x256xf32>
    %103 = vector.extract_strided_slice %101 {offsets = [0, 0], sizes = [2, 256], strides = [1, 1]} : vector<2x384xf32> to vector<2x256xf32>
    %104 = arith.addf %102, %103 : vector<2x256xf32>
    %105 = arith.negf %104 : vector<2x256xf32>
    %106 = math.exp %105 : vector<2x256xf32>
    %cst_19 = arith.constant 1.000000e+00 : f32
    %107 = vector.broadcast %cst_19 : f32 to vector<2x256xf32>
    %108 = arith.addf %107, %106 : vector<2x256xf32>
    %109 = arith.divf %107, %108 : vector<2x256xf32>
    %110 = vector.extract_strided_slice %109 {offsets = [0, 0], sizes = [2, 128], strides = [1, 1]} : vector<2x256xf32> to vector<2x128xf32>
    %111 = vector.extract_strided_slice %109 {offsets = [0, 128], sizes = [2, 128], strides = [1, 1]} : vector<2x256xf32> to vector<2x128xf32>
    %112 = vector.extract_strided_slice %99 {offsets = [0, 256], sizes = [2, 128], strides = [1, 1]} : vector<2x384xf32> to vector<2x128xf32>
    %113 = vector.extract_strided_slice %101 {offsets = [0, 256], sizes = [2, 128], strides = [1, 1]} : vector<2x384xf32> to vector<2x128xf32>
    %114 = arith.addf %113, %9 : vector<2x128xf32>
    %115 = arith.mulf %110, %114 : vector<2x128xf32>
    %116 = arith.addf %112, %115 : vector<2x128xf32>
    %117 = math.tanh %116 : vector<2x128xf32>
    %118 = arith.subf %98, %117 : vector<2x128xf32>
    %119 = arith.mulf %111, %118 : vector<2x128xf32>
    %120 = arith.addf %117, %119 : vector<2x128xf32>
    %121 = vector.extract_strided_slice %5 {offsets = [10, 0], sizes = [2, 384], strides = [1, 1]} : vector<16x384xf32> to vector<2x384xf32>
    %122 = arith.truncf %120 : vector<2x128xf32> to vector<2x128xbf16>
    %cst_20 = arith.constant dense<0.000000e+00> : vector<2x384xf32>
    %123 = tpu.matmul %122, %6, %cst_20 {dimension_numbers = #tpu.dot_dimension_numbers<[1], [0], [0], [1], [0, 0, 1, 1], [], []>} : vector<2x128xbf16>, vector<128x384xbf16>, vector<2x384xf32> -> vector<2x384xf32>
    %124 = vector.extract_strided_slice %121 {offsets = [0, 0], sizes = [2, 256], strides = [1, 1]} : vector<2x384xf32> to vector<2x256xf32>
    %125 = vector.extract_strided_slice %123 {offsets = [0, 0], sizes = [2, 256], strides = [1, 1]} : vector<2x384xf32> to vector<2x256xf32>
    %126 = arith.addf %124, %125 : vector<2x256xf32>
    %127 = arith.negf %126 : vector<2x256xf32>
    %128 = math.exp %127 : vector<2x256xf32>
    %cst_21 = arith.constant 1.000000e+00 : f32
    %129 = vector.broadcast %cst_21 : f32 to vector<2x256xf32>
    %130 = arith.addf %129, %128 : vector<2x256xf32>
    %131 = arith.divf %129, %130 : vector<2x256xf32>
    %132 = vector.extract_strided_slice %131 {offsets = [0, 0], sizes = [2, 128], strides = [1, 1]} : vector<2x256xf32> to vector<2x128xf32>
    %133 = vector.extract_strided_slice %131 {offsets = [0, 128], sizes = [2, 128], strides = [1, 1]} : vector<2x256xf32> to vector<2x128xf32>
    %134 = vector.extract_strided_slice %121 {offsets = [0, 256], sizes = [2, 128], strides = [1, 1]} : vector<2x384xf32> to vector<2x128xf32>
    %135 = vector.extract_strided_slice %123 {offsets = [0, 256], sizes = [2, 128], strides = [1, 1]} : vector<2x384xf32> to vector<2x128xf32>
    %136 = arith.addf %135, %9 : vector<2x128xf32>
    %137 = arith.mulf %132, %136 : vector<2x128xf32>
    %138 = arith.addf %134, %137 : vector<2x128xf32>
    %139 = math.tanh %138 : vector<2x128xf32>
    %140 = arith.subf %120, %139 : vector<2x128xf32>
    %141 = arith.mulf %133, %140 : vector<2x128xf32>
    %142 = arith.addf %139, %141 : vector<2x128xf32>
    %143 = vector.extract_strided_slice %5 {offsets = [12, 0], sizes = [2, 384], strides = [1, 1]} : vector<16x384xf32> to vector<2x384xf32>
    %144 = arith.truncf %142 : vector<2x128xf32> to vector<2x128xbf16>
    %cst_22 = arith.constant dense<0.000000e+00> : vector<2x384xf32>
    %145 = tpu.matmul %144, %6, %cst_22 {dimension_numbers = #tpu.dot_dimension_numbers<[1], [0], [0], [1], [0, 0, 1, 1], [], []>} : vector<2x128xbf16>, vector<128x384xbf16>, vector<2x384xf32> -> vector<2x384xf32>
    %146 = vector.extract_strided_slice %143 {offsets = [0, 0], sizes = [2, 256], strides = [1, 1]} : vector<2x384xf32> to vector<2x256xf32>
    %147 = vector.extract_strided_slice %145 {offsets = [0, 0], sizes = [2, 256], strides = [1, 1]} : vector<2x384xf32> to vector<2x256xf32>
    %148 = arith.addf %146, %147 : vector<2x256xf32>
    %149 = arith.negf %148 : vector<2x256xf32>
    %150 = math.exp %149 : vector<2x256xf32>
    %cst_23 = arith.constant 1.000000e+00 : f32
    %151 = vector.broadcast %cst_23 : f32 to vector<2x256xf32>
    %152 = arith.addf %151, %150 : vector<2x256xf32>
    %153 = arith.divf %151, %152 : vector<2x256xf32>
    %154 = vector.extract_strided_slice %153 {offsets = [0, 0], sizes = [2, 128], strides = [1, 1]} : vector<2x256xf32> to vector<2x128xf32>
    %155 = vector.extract_strided_slice %153 {offsets = [0, 128], sizes = [2, 128], strides = [1, 1]} : vector<2x256xf32> to vector<2x128xf32>
    %156 = vector.extract_strided_slice %143 {offsets = [0, 256], sizes = [2, 128], strides = [1, 1]} : vector<2x384xf32> to vector<2x128xf32>
    %157 = vector.extract_strided_slice %145 {offsets = [0, 256], sizes = [2, 128], strides = [1, 1]} : vector<2x384xf32> to vector<2x128xf32>
    %158 = arith.addf %157, %9 : vector<2x128xf32>
    %159 = arith.mulf %154, %158 : vector<2x128xf32>
    %160 = arith.addf %156, %159 : vector<2x128xf32>
    %161 = math.tanh %160 : vector<2x128xf32>
    %162 = arith.subf %142, %161 : vector<2x128xf32>
    %163 = arith.mulf %155, %162 : vector<2x128xf32>
    %164 = arith.addf %161, %163 : vector<2x128xf32>
    %165 = vector.extract_strided_slice %5 {offsets = [14, 0], sizes = [2, 384], strides = [1, 1]} : vector<16x384xf32> to vector<2x384xf32>
    %166 = arith.truncf %164 : vector<2x128xf32> to vector<2x128xbf16>
    %cst_24 = arith.constant dense<0.000000e+00> : vector<2x384xf32>
    %167 = tpu.matmul %166, %6, %cst_24 {dimension_numbers = #tpu.dot_dimension_numbers<[1], [0], [0], [1], [0, 0, 1, 1], [], []>} : vector<2x128xbf16>, vector<128x384xbf16>, vector<2x384xf32> -> vector<2x384xf32>
    %168 = vector.extract_strided_slice %165 {offsets = [0, 0], sizes = [2, 256], strides = [1, 1]} : vector<2x384xf32> to vector<2x256xf32>
    %169 = vector.extract_strided_slice %167 {offsets = [0, 0], sizes = [2, 256], strides = [1, 1]} : vector<2x384xf32> to vector<2x256xf32>
    %170 = arith.addf %168, %169 : vector<2x256xf32>
    %171 = arith.negf %170 : vector<2x256xf32>
    %172 = math.exp %171 : vector<2x256xf32>
    %cst_25 = arith.constant 1.000000e+00 : f32
    %173 = vector.broadcast %cst_25 : f32 to vector<2x256xf32>
    %174 = arith.addf %173, %172 : vector<2x256xf32>
    %175 = arith.divf %173, %174 : vector<2x256xf32>
    %176 = vector.extract_strided_slice %175 {offsets = [0, 0], sizes = [2, 128], strides = [1, 1]} : vector<2x256xf32> to vector<2x128xf32>
    %177 = vector.extract_strided_slice %175 {offsets = [0, 128], sizes = [2, 128], strides = [1, 1]} : vector<2x256xf32> to vector<2x128xf32>
    %178 = vector.extract_strided_slice %165 {offsets = [0, 256], sizes = [2, 128], strides = [1, 1]} : vector<2x384xf32> to vector<2x128xf32>
    %179 = vector.extract_strided_slice %167 {offsets = [0, 256], sizes = [2, 128], strides = [1, 1]} : vector<2x384xf32> to vector<2x128xf32>
    %180 = arith.addf %179, %9 : vector<2x128xf32>
    %181 = arith.mulf %176, %180 : vector<2x128xf32>
    %182 = arith.addf %178, %181 : vector<2x128xf32>
    %183 = math.tanh %182 : vector<2x128xf32>
    %184 = arith.subf %164, %183 : vector<2x128xf32>
    %185 = arith.mulf %177, %184 : vector<2x128xf32>
    %186 = arith.addf %183, %185 : vector<2x128xf32>
    %187 = arith.truncf %186 : vector<2x128xf32> to vector<2x128xbf16>
    %c0_26 = arith.constant 0 : index
    %c0_27 = arith.constant 0 : index
    %188 = vector.load %arg5[%c0_26, %c0_27] : memref<128x2xbf16, #tpu.memory_space<vmem>>, vector<128x2xbf16>
    %cst_28 = arith.constant dense<0.000000e+00> : vector<2x2xf32>
    %189 = tpu.matmul %187, %188, %cst_28 {dimension_numbers = #tpu.dot_dimension_numbers<[1], [0], [0], [1], [0, 0, 1, 1], [], []>} : vector<2x128xbf16>, vector<128x2xbf16>, vector<2x2xf32> -> vector<2x2xf32>
    %c0_29 = arith.constant 0 : index
    %c0_30 = arith.constant 0 : index
    %190 = vector.load %arg6[%c0_29, %c0_30] : memref<1x2xf32, #tpu.memory_space<vmem>>, vector<1x2xf32>
    %191 = vector.broadcast %190 : vector<1x2xf32> to vector<2x2xf32>
    %192 = arith.addf %189, %191 : vector<2x2xf32>
    %c0_31 = arith.constant 0 : index
    %c0_32 = arith.constant 0 : index
    %193 = vector.load %arg7[%c0_31, %c0_32] : memref<2x2xf32, #tpu.memory_space<vmem>>, vector<2x2xf32>
    tpu.vector_store %arg7[%c0_31, %c0_32], %192 {strides = array<i32>} : memref<2x2xf32, #tpu.memory_space<vmem>>, vector<2x2xf32>,
    return
  }
}

</mosaic_0001>

<bundles_post_ra>
// kernel: tpu_custom_call.1
= control target key start
LH: loop header
LB: loop body
LE: loop exit
PB: predicated region body
PF: predicated region fallthrough
CT: control target
= control target key end

     0   :  { %12 = vsyncpa [#allocation3], 0  ;;  %s2439_s0 = inlined_call_operand.vmem [shape: bf16[16,10], index: 0, kind: input, shape index: {}]   ;;  %s2440_s1 = inlined_call_operand.vmem [shape: bf16[10,384], index: 1, kind: input, shape index: {}]   ;;  %s2441_s2 = inlined_call_operand.vmem [shape: f32[1,384], index: 2, kind: input, shape index: {}]   ;;  %s2442_s3 = inlined_call_operand.hbm [shape: bf16[128,384], index: 3, kind: input, shape index: {}]   ;;  %s2443_s4 = inlined_call_operand.vmem [shape: f32[1,128], index: 4, kind: input, shape index: {}]   ;;  %s2444_s5 = inlined_call_operand.vmem [shape: bf16[128,2], index: 5, kind: input, shape index: {}]   ;;  %s2445_s6 = inlined_call_operand.vmem [shape: f32[1,2], index: 6, kind: input, shape index: {}]   ;;  %s2446_s7 = inlined_call_operand.hbm [shape: f32[2,2], index: 7, kind: output, shape index: {}]  }
   0x1   :  { %13 = vsyncpa [#allocation4], 0  ;;  %s1933_s24 = smov [#allocation2]  }
   0x2   :  { %s25_s25 = sshll.u32 %s1933_s24, 4  ;;  %s26_s25 = int_to_ptr.vmem [resolvable:$true] %s25_s25 }
   0x3   :  { %s1897_s26 = scalar_lea.vmem %s26_s25, 3072  ;;  %p1902_p1 = scmp.lt.s32.totalorder %s26_s25, %s26_s25 }
   0x4   :  { %p1898_p0 = scmp.ne.s32.totalorder %s26_s25, %s1897_s26  ;;  %p1903_p2 = scmp.lt.s32.totalorder %s1897_s26, %s1897_s26 }
   0x6   :  { %p1904_p3 = por %p1903_p2, %p1902_p1 }
   0x8   :  { %p1905_p4 = pnand %p1904_p3, %p1898_p0 }
   0xa   :  { %1908 = shalt.err (!%p1905_p4)
}
   0xb   :  { %s1934_s27 = smov 192   ;;  %s1935_s28 = smov 12  }
   0xc   :  { %31 = dma.hbm_to_vmem [thread:$0]  %s2442_s3, 3072, %s26_s25, [#allocation3], %s1934_s27, %s1934_s27, %s1935_s28  }
   0xd   :  { %1929 = dma.done.wait [#allocation3], 3072  }
   0xe   :  { %1930 = vsyncadd [#allocation3], 4294964224  ;;  %v1936_v0 = vmov 0   ;;  %v1985_v1 = vld [vmem:[#allocation2 + $0xac] ss:$12 sps:$4 sm:$0xff]   ;;  %vm87_vm0 = vcmask 1044480   ;;  %v50_v32 = vlaneseq }
   0xf   :  { %129 = vmatprep.mubr.bf16.mxu1 %v1936_v0  ;;  %380 = vmatprep.mubr.bf16.mxu0 %v1936_v0  ;;  %v1987_v2 = vld [vmem:[#allocation2 + $0xa8] ss:$12 sps:$4 sm:$0xff]   ;;  %v1993_v4 = vld [vmem:[#allocation2 + $0x90] ss:$12 sps:$4 sm:$0xff]   ;;  %v2005_v8 = vld [vmem:[#allocation2 + $0x78] ss:$12 sps:$4 sm:$0xff]  }
  0x10   :  { %348 = vmatprep.subr.bf16.mxu0 %v1985_v1  ;;  %v1990_v3 = vld [vmem:[#allocation2 + $0x94] ss:$12 sps:$4 sm:$0xff]   ;;  %v1996_v5 = vld [vmem:[#allocation2 + $0x7c] ss:$12 sps:$4 sm:$0xff]   ;;  %v2008_v9 = vld [vmem:[#allocation2 + $0x64] ss:$12 sps:$4 sm:$0xff]  }
  0x11   :  { %349 = vmatpush1.bf16.msra.mxu0 %v1987_v2  ;;  %v1759_v6 = vld [vmem:[%s2440_s1 + $0x4] ss:$12 sps:$4 sm:$0x1f]   ;;  %v1761_v7 = vld [vmem:[%s2440_s1] ss:$12 sps:$4 sm:$0x1f]  }
  0x12   :  { %350 = vmatprep.subr.bf16.mxu0 %v1990_v3  ;;  %1418 = vmatprep.subr.msk.bf16.mxu1 %vm87_vm0, %v1759_v6  ;;  %v89_v10 = vsel %vm87_vm0, %v1761_v7, 0  ;;  %v1765_v11 = vld [vmem:[%s2439_s0] sm:$0xff]   ;;  %vm83_vm1 = vcmask 80896   ;;  %v1937_v13 = vmov 0.0   ;;  %v2023_v15 = vld [vmem:[#allocation2 + $0x4c] ss:$12 sps:$4 sm:$0xff]  }
  0x13   :  { %112 = vmatpush1.bf16.msra.mxu1 %v89_v10  ;;  %v2015_v12 = vld [vmem:[#allocation2 + $0x60] ss:$12 sps:$4 sm:$0xff]   ;;  %v1769_v14 = vld [vmem:[%s2440_s1 + $0x8] ss:$12 sps:$4 sm:$0x1f]   ;;  %vm1938_vm2 = vmmov 0  }
  0x14   :  { %1554 = vmatprep.subr.bf16.mxu1 %v1937_v13  ;;  %v95_v16 = vsel %vm87_vm0, %v1769_v14, 0  ;;  %v2030_v17 = vld [vmem:[#allocation2 + $0x48] ss:$12 sps:$4 sm:$0xff]   ;;  %v2036_v19 = vld [vmem:[#allocation2 + $0xb0] ss:$12 sps:$4 sm:$0xff]   ;;  %v51_v33 = vshrl.u32 %v50_v32, 7 }
  0x15   :  { %351 = vmatpush1.bf16.msra.mxu0 %v1993_v4  ;;  %v2034_v18 = vld [vmem:[#allocation2 + $0x34] ss:$12 sps:$4 sm:$0xff]   ;;  %v2039_v20 = vld [vmem:[#allocation2 + $0x30] ss:$12 sps:$4 sm:$0xff]   ;;  %v2046_v22 = vld [vmem:[#allocation2 + $0x98] ss:$12 sps:$4 sm:$0xff]  }
  0x16   :  { %352 = vmatprep.subr.bf16.mxu0 %v1996_v5  ;;  %1419 = vmatmul.mubr.msk.bf16.vlgmr.msra.gmra.mxu1 %vm83_vm1, %v1765_v11  ;;  %v2042_v21 = vld [vmem:[#allocation2 + $0x1c] ss:$12 sps:$4 sm:$0xff]   ;;  %v2050_v23 = vld [vmem:[#allocation2 + $0x18] ss:$12 sps:$4 sm:$0xff]   ;;  %v2056_v25 = vld [vmem:[#allocation2 + $0x80] ss:$12 sps:$4 sm:$0xff]  }
  0x17   :  { %1556 = vmatprep.mubr.msk.bf16.mxu1 %vm1938_vm2, %v1937_v13  ;;  %1555 = vmatpush3.bf16.msra.mxu1 %v95_v16  ;;  %v2052_v24 = vld [vmem:[#allocation2 + $0x4] ss:$12 sps:$4 sm:$0xff]   ;;  %v2059_v26 = vld [vmem:[#allocation2] ss:$12 sps:$4 sm:$0xff]   ;;  %v2066_v27 = vld [vmem:[#allocation2 + $0x68] ss:$12 sps:$4 sm:$0xff]  }
  0x18   :  { %1560 = vmatprep.subr.bf16.mxu1 %v1937_v13  ;;  %v2072_v28 = vld [vmem:[#allocation2 + $0x50] ss:$12 sps:$4 sm:$0xff]   ;;  %v2080_v29 = vld [vmem:[#allocation2 + $0x38] ss:$12 sps:$4 sm:$0xff]   ;;  %v2086_v30 = vld [vmem:[#allocation2 + $0x20] ss:$12 sps:$4 sm:$0xff]  }
  0x19   :  { %353 = vmatpush1.bf16.msra.mxu0 %v2005_v8  ;;  %v2092_v31 = vld [vmem:[#allocation2 + $0x8] ss:$12 sps:$4 sm:$0xff]   ;;  %v52_v34 = vsub.s32 0, %v51_v33  ;;  %v48_v35 = vld [vmem:[%s2441_s2] sm:$0x7]  ;;  %v56_v36 = vsub.s32 1, %v51_v33 }
  0x1a   :  { %354 = vmatprep.subr.bf16.mxu0 %v2008_v9  ;;  %v60_v43 = vsub.s32 2, %v51_v33  ;;  %v2144_v14 = vld [vmem:[%s2443_s4] ss:$0 sm:$0xff]  ;;  %s1939_s8 = smov [#allocation5]   ;;  %vm1397_vm3 = vcmask 9216  }
  0x1b   :  { %v53_v38 = vrot.slane %v48_v35, %v52_v34  ;;  %v57_v40 = vrot.slane %v48_v35, %v56_v36  ;;  %s1405_s9 = sshll.u32 %s1939_s8, 4  ;;  %s1406_s9 = int_to_ptr.vmem [resolvable:$true] %s1405_s9 }
  0x1c   :  { %v61_v47 = vrot.slane %v48_v35, %v60_v43  ;;  %s1909_s10 = scalar_lea.vmem %s1406_s9, 32  ;;  %p1914_p6 = scmp.lt.s32.totalorder %s1406_s9, %s1406_s9 }
  0x1d   :  { %355 = vmatpush1.bf16.msra.mxu0 %v2015_v12  ;;  %p1910_p5 = scmp.ne.s32.totalorder %s1406_s9, %s1909_s10  ;;  %p1915_p7 = scmp.lt.s32.totalorder %s1909_s10, %s1909_s10 }
  0x1e   :  { %356 = vmatprep.subr.bf16.mxu0 %v2023_v15  ;;  %1557 = vmatmul.mubr.msk.bf16.vlgmr.msra.gmra.mxu1 %vm83_vm1, %v1765_v11 }
  0x1f   :  { %1561 = vmatpush3.bf16.msra.mxu1 %v2036_v19  ;;  %1576 = vmatprep.mubr.msk.bf16.mxu1 %vm1938_vm2, %v1937_v13  ;;  %p1916_p8 = por %p1915_p7, %p1914_p6 }
  0x20   :  { %1562 = vmatprep.subr.bf16.mxu1 %v1937_v13 }
  0x21   :  { %357 = vmatpush1.bf16.msra.mxu0 %v2030_v17  ;;  %p1917_p9 = pnand %p1916_p8, %p1910_p5 }
  0x22   :  { %358 = vmatprep.subr.bf16.mxu0 %v2034_v18 }
  0x23   :  { %1563 = vmatpush3.bf16.msra.mxu1 %v2046_v22 }
  0x24   :  { %1564 = vmatprep.subr.bf16.mxu1 %v1937_v13 }
  0x25   :  { %359 = vmatpush1.bf16.msra.mxu0 %v2039_v20 }
  0x26   :  { %360 = vmatprep.subr.bf16.mxu0 %v2042_v21 }
  0x27   :  { %1565 = vmatpush3.bf16.msra.mxu1 %v2056_v25 }
  0x28   :  { %1566 = vmatprep.subr.bf16.mxu1 %v1937_v13 }
  0x29   :  { %361 = vmatpush1.bf16.msra.mxu0 %v2050_v23 }
  0x2a   :  { %362 = vmatprep.subr.bf16.mxu0 %v2052_v24 }
  0x2b   :  { %1567 = vmatpush3.bf16.msra.mxu1 %v2066_v27 }
  0x2c   :  { %1568 = vmatprep.subr.bf16.mxu1 %v1937_v13 }
  0x2d   :  { %363 = vmatpush1.bf16.msra.mxu0 %v2059_v26 }
  0x2e   :  { %451 = vmatprep.subr.bf16.mxu0 %v1985_v1 }
  0x2f   :  { %1569 = vmatpush3.bf16.msra.mxu1 %v2072_v28 }
  0x30   :  { %381 = vmatmul.mubr.bf16.vlgmr.msra.gmra.mxu0 %v1936_v0  ;;  %1570 = vmatprep.subr.bf16.mxu1 %v1937_v13 }
  0x31   :  { %452 = vmatpush1.bf16.msra.mxu0 %v1987_v2  ;;  %483 = vmatprep.mubr.bf16.mxu0 %v1936_v0 }
  0x32   :  { %453 = vmatprep.subr.bf16.mxu0 %v1990_v3 }
  0x33   :  { %1571 = vmatpush3.bf16.msra.mxu1 %v2080_v29 }
  0x34   :  { %1572 = vmatprep.subr.bf16.mxu1 %v1937_v13 }
  0x35   :  { %454 = vmatpush1.bf16.msra.mxu0 %v1993_v4 }
  0x36   :  { %455 = vmatprep.subr.bf16.mxu0 %v1996_v5 }
  0x37   :  { %1573 = vmatpush3.bf16.msra.mxu1 %v2086_v30 }
  0x38   :  { %1574 = vmatprep.subr.bf16.mxu1 %v1937_v13 }
  0x39   :  { %456 = vmatpush1.bf16.msra.mxu0 %v2005_v8 }
  0x3a   :  { %457 = vmatprep.subr.bf16.mxu0 %v2008_v9 }
  0x3b   :  { %1575 = vmatpush3.bf16.msra.mxu1 %v2092_v31 }
  0x3c   :  { %1580 = vmatprep.subr.bf16.mxu1 %v1937_v13 }
  0x3d   :  { %458 = vmatpush1.bf16.msra.mxu0 %v2015_v12 }
  0x3e   :  { %459 = vmatprep.subr.bf16.mxu0 %v2023_v15  ;;  %1577 = vmatmul.mubr.bf16.vlgmr.msra.gmra.mxu1 %v1936_v0 }
  0x3f   :  { %1581 = vmatpush3.bf16.msra.mxu1 %v2036_v19  ;;  %1596 = vmatprep.mubr.msk.bf16.mxu1 %vm1938_vm2, %v1937_v13 }
  0x40   :  { %1582 = vmatprep.subr.bf16.mxu1 %v1937_v13 }
  0x41   :  { %460 = vmatpush1.bf16.msra.mxu0 %v2030_v17 }
  0x42   :  { %461 = vmatprep.subr.bf16.mxu0 %v2034_v18 }
  0x43   :  { %1583 = vmatpush3.bf16.msra.mxu1 %v2046_v22 }
  0x44   :  { %1584 = vmatprep.subr.bf16.mxu1 %v1937_v13 }
  0x45   :  { %462 = vmatpush1.bf16.msra.mxu0 %v2039_v20 }
  0x46   :  { %463 = vmatprep.subr.bf16.mxu0 %v2042_v21 }
  0x47   :  { %1585 = vmatpush3.bf16.msra.mxu1 %v2056_v25 }
  0x48   :  { %1586 = vmatprep.subr.bf16.mxu1 %v1937_v13 }
  0x49   :  { %464 = vmatpush1.bf16.msra.mxu0 %v2050_v23 }
  0x4a   :  { %465 = vmatprep.subr.bf16.mxu0 %v2052_v24 }
  0x4b   :  { %1587 = vmatpush3.bf16.msra.mxu1 %v2066_v27 }
  0x4c   :  { %1588 = vmatprep.subr.bf16.mxu1 %v1937_v13 }
  0x4d   :  { %466 = vmatpush1.bf16.msra.mxu0 %v2059_v26 }
  0x4e   :  { %572 = vmatprep.subr.bf16.mxu0 %v1985_v1 }
  0x4f   :  { %1589 = vmatpush3.bf16.msra.mxu1 %v2072_v28 }
  0x50   :  { %1590 = vmatprep.subr.bf16.mxu1 %v1937_v13 }
  0x53   :  { %1591 = vmatpush3.bf16.msra.mxu1 %v2080_v29 }
  0x54   :  { %1592 = vmatprep.subr.bf16.mxu1 %v1937_v13 }
  0x57   :  { %1593 = vmatpush3.bf16.msra.mxu1 %v2086_v30 }
  0x58   :  { %1594 = vmatprep.subr.bf16.mxu1 %v1937_v13 }
  0x5b   :  { %1595 = vmatpush3.bf16.msra.mxu1 %v2092_v31 }
  0x5c   :  { %1600 = vmatprep.subr.bf16.mxu1 %v1937_v13 }
  0xd6   :  { %v131_v37 = vpop.f32.mrf.mxu1 }
  0xd7   :  { %v2135_v52 = vadd.f32 %v131_v37, %v53_v38 }
  0xd8   :  { %v133_v39 = vpop.f32.mrf.mxu1 }
  0xd9   :  { %v2138_v59 = vadd.f32 %v133_v39, %v57_v40 }
  0xda   :  { %v135_v41 = vpop.f32.mrf.mxu1 }
  0xdb   :  { %v2129_v42 = vadd.f32 %v135_v41, %v53_v38 }
  0xdc   :  { %v137_v44 = vpop.f32.mrf.mxu1 }
  0xdd   :  { %v2131_v45 = vadd.f32 %v137_v44, %v57_v40 }
  0xde   :  { %v174_v46 = vpop.f32.mrf.mxu1 }
  0xdf   :  { %v2147_v34 = vadd.f32 %v174_v46, %v61_v47 }
  0xe0   :  { %v1558_v48 = vpop.f32.mrf.mxu1 }
  0xe2   :  { %v177_v49 = vpop.f32.mrf.mxu1 }
  0xe3   :  { %v2133_v50 = vadd.f32 %v177_v49, %v61_v47 }
  0xe4   :  { %v1559_v51 = vpop.f32.mrf.mxu1 }
  0xf0   :  { %v382_v53 = vpop.f32.mrf.mxu0 }
  0xf1   :  { %v429_v54 = vadd.f32 %v382_v53, %v2135_v52 }
  0xf2   :  { %v384_v55 = vpop.f32.mrf.mxu0 }
  0xf3   :  { %v1446_v56 = vmul.f32 -1.442695, %v429_v54  ;;  %v430_v60 = vadd.f32 %v384_v55, %v2138_v59 }
  0xf4   :  { %v386_v57 = vpop.f32.mrf.mxu0 }
  0xf5   :  { %1792 = vpow2.f32 %v1446_v56  ;;  %v1447_v61 = vmul.f32 -1.442695, %v430_v60 }
  0xf6   :  { %v387_v58 = vpop.f32.mrf.mxu0 }
  0xf7   :  { %1794 = vpow2.f32 %v1447_v61 }
  0xfe   :  { %v423_v63 = vpop.f32.mrf.mxu1 }
  0xff   :  { %v443_v16 = vadd.f32 %v2144_v14, %v423_v63 }
 0x100   :  { %v1578_v7 = vpop.f32.mrf.mxu1 }
 0x102   :  { %v1793_v62 = vpop.eup %1792  ;;  %v426_v10 = vpop.f32.mrf.mxu1 }
 0x103   :  { %v437_v6 = vadd.f32 1.0, %v1793_v62 }
 0x104   :  { %v1579_v11 = vpop.f32.mrf.mxu1  ;;  %v1795_v32 = vpop.eup %1794 }
 0x105   :  { %1796 = vrcp.f32 %v437_v6  ;;  %v438_v36 = vadd.f32 1.0, %v1795_v32 }
 0x112   :  { %v1797_v33 = vpop.eup %1796 }
 0x113   :  { %v444_v35 = vmul.f32 %v1797_v33, %v443_v16 }
 0x115   :  { %v445_v37 = vadd.f32 %v444_v35, %v2147_v34 }
 0x117   :  { %1798 = vtanh.f32 %v445_v37 }
 0x118   :  { %1800 = vrcp.f32 %v438_v36 }
 0x124   :  { %v1799_v38 = vpop.eup %1798 }
 0x125   :  { %v447_v39 = vsub.f32 0.0, %v1799_v38  ;;  %v1801_v40 = vpop.eup %1800 }
 0x127   :  { %v448_v41 = vmul.f32 %v1801_v40, %v447_v39 }
 0x129   :  { %v2150_v43 = vadd.f32 %v1799_v38, %v448_v41 }
 0x12b   :  { %v450_v44 = vpack.c.bf16 %v2150_v43, %v2150_v43 }
 0x12d   :  { %484 = vmatmul.mubr.bf16.vlgmr.msra.gmra.mxu0 %v450_v44  ;;  %1597 = vmatmul.mubr.bf16.vlgmr.msra.gmra.mxu1 %v450_v44 }
 0x12e   :  { %573 = vmatpush1.bf16.msra.mxu0 %v1987_v2  ;;  %1601 = vmatpush3.bf16.msra.mxu1 %v2036_v19 }
 0x12f   :  { %574 = vmatprep.subr.bf16.mxu0 %v1990_v3  ;;  %1602 = vmatprep.subr.bf16.mxu1 %v1937_v13 }
 0x130   :  { %604 = vmatprep.mubr.bf16.mxu0 %v1936_v0  ;;  %1616 = vmatprep.mubr.msk.bf16.mxu1 %vm1938_vm2, %v1937_v13 }
 0x132   :  { %575 = vmatpush1.bf16.msra.mxu0 %v1993_v4  ;;  %1603 = vmatpush3.bf16.msra.mxu1 %v2046_v22 }
 0x133   :  { %576 = vmatprep.subr.bf16.mxu0 %v1996_v5  ;;  %1604 = vmatprep.subr.bf16.mxu1 %v1937_v13 }
 0x136   :  { %577 = vmatpush1.bf16.msra.mxu0 %v2005_v8  ;;  %1605 = vmatpush3.bf16.msra.mxu1 %v2056_v25 }
 0x137   :  { %578 = vmatprep.subr.bf16.mxu0 %v2008_v9  ;;  %1606 = vmatprep.subr.bf16.mxu1 %v1937_v13 }
 0x13a   :  { %579 = vmatpush1.bf16.msra.mxu0 %v2015_v12  ;;  %1607 = vmatpush3.bf16.msra.mxu1 %v2066_v27 }
 0x13b   :  { %580 = vmatprep.subr.bf16.mxu0 %v2023_v15  ;;  %1608 = vmatprep.subr.bf16.mxu1 %v1937_v13 }
 0x13e   :  { %581 = vmatpush1.bf16.msra.mxu0 %v2030_v17  ;;  %1609 = vmatpush3.bf16.msra.mxu1 %v2072_v28 }
 0x13f   :  { %582 = vmatprep.subr.bf16.mxu0 %v2034_v18  ;;  %1610 = vmatprep.subr.bf16.mxu1 %v1937_v13 }
 0x142   :  { %583 = vmatpush1.bf16.msra.mxu0 %v2039_v20  ;;  %1611 = vmatpush3.bf16.msra.mxu1 %v2080_v29 }
 0x143   :  { %584 = vmatprep.subr.bf16.mxu0 %v2042_v21  ;;  %1612 = vmatprep.subr.bf16.mxu1 %v1937_v13 }
 0x146   :  { %585 = vmatpush1.bf16.msra.mxu0 %v2050_v23  ;;  %1613 = vmatpush3.bf16.msra.mxu1 %v2086_v30 }
 0x147   :  { %586 = vmatprep.subr.bf16.mxu0 %v2052_v24  ;;  %1614 = vmatprep.subr.bf16.mxu1 %v1937_v13 }
 0x14a   :  { %587 = vmatpush1.bf16.msra.mxu0 %v2059_v26  ;;  %1615 = vmatpush3.bf16.msra.mxu1 %v2092_v31 }
 0x14b   :  { %693 = vmatprep.subr.bf16.mxu0 %v1985_v1  ;;  %1620 = vmatprep.subr.bf16.mxu1 %v1937_v13 }
 0x1ed   :  { %v485_v46 = vpop.f32.mrf.mxu0  ;;  %v526_v47 = vpop.f32.mrf.mxu1 }
 0x1ee   :  { %v534_v48 = vrot.slane %v485_v46, 6  ;;  %v552_v7 = vadd.f32 %v2144_v14, %v526_v47 }
 0x1ef   :  { %v487_v49 = vpop.f32.mrf.mxu0  ;;  %v1598_v51 = vpop.f32.mrf.mxu1 }
 0x1f0   :  { %v538_v53 = vadd.f32 %v534_v48, %v2135_v52  ;;  %v535_v60 = vrot.slane %v487_v49, 6  ;;  %v554_v10 = vrot.slane %v552_v7, 6 }
 0x1f1   :  { %v489_v54 = vpop.f32.mrf.mxu0  ;;  %v529_v55 = vpop.f32.mrf.mxu1 }
 0x1f2   :  { %v1448_v56 = vmul.f32 -1.442695, %v538_v53  ;;  %v539_v61 = vadd.f32 %v535_v60, %v2138_v59 }
 0x1f3   :  { %v490_v57 = vpop.f32.mrf.mxu0  ;;  %v1599_v58 = vpop.f32.mrf.mxu1 }
 0x1f4   :  { %1802 = vpow2.f32 %v1448_v56  ;;  %v1449_v6 = vmul.f32 -1.442695, %v539_v61 }
 0x201   :  { %v1803_v62 = vpop.eup %1802 }
 0x202   :  { %v546_v63 = vadd.f32 1.0, %v1803_v62 }
 0x204   :  { %1804 = vrcp.f32 %v546_v63 }
 0x205   :  { %1806 = vpow2.f32 %v1449_v6 }
 0x211   :  { %v1805_v11 = vpop.eup %1804 }
 0x212   :  { %v556_v16 = vmul.f32 %v1805_v11, %v554_v10  ;;  %v1807_v33 = vpop.eup %1806 }
 0x213   :  { %v547_v35 = vadd.f32 1.0, %v1807_v33 }
 0x214   :  { %v557_v32 = vadd.f32 %v556_v16, %v2147_v34 }
 0x216   :  { %1808 = vtanh.f32 %v557_v32 }
 0x217   :  { %1810 = vrcp.f32 %v547_v35 }
 0x223   :  { %v1809_v36 = vpop.eup %1808 }
 0x224   :  { %v560_v37 = vrot.slane %v1809_v36, 2  ;;  %v1811_v40 = vpop.eup %1810 }
 0x226   :  { %v562_v38 = vsub.f32 %v2150_v43, %v560_v37 }
 0x228   :  { %v564_v39 = vrot.slane %v562_v38, 6 }
 0x22a   :  { %v566_v41 = vmul.f32 %v1811_v40, %v564_v39 }
 0x22c   :  { %v2194_v44 = vadd.f32 %v1809_v36, %v566_v41 }
 0x22e   :  { %v568_v46 = vpack.c.bf16 %v2194_v44, %v2194_v44 }
 0x230   :  { %v570_v47 = vrot.slane %v568_v46, 1 }
 0x232   :  { %605 = vmatmul.mubr.bf16.vlgmr.msra.gmra.mxu0 %v570_v47  ;;  %1617 = vmatmul.mubr.bf16.vlgmr.msra.gmra.mxu1 %v570_v47 }
 0x233   :  { %694 = vmatpush1.bf16.msra.mxu0 %v1987_v2  ;;  %1621 = vmatpush3.bf16.msra.mxu1 %v2036_v19 }
 0x234   :  { %695 = vmatprep.subr.bf16.mxu0 %v1990_v3  ;;  %1622 = vmatprep.subr.bf16.mxu1 %v1937_v13 }
 0x235   :  { %725 = vmatprep.mubr.bf16.mxu0 %v1936_v0  ;;  %1636 = vmatprep.mubr.msk.bf16.mxu1 %vm1938_vm2, %v1937_v13 }
 0x237   :  { %696 = vmatpush1.bf16.msra.mxu0 %v1993_v4  ;;  %1623 = vmatpush3.bf16.msra.mxu1 %v2046_v22 }
 0x238   :  { %697 = vmatprep.subr.bf16.mxu0 %v1996_v5  ;;  %1624 = vmatprep.subr.bf16.mxu1 %v1937_v13 }
 0x23b   :  { %698 = vmatpush1.bf16.msra.mxu0 %v2005_v8  ;;  %1625 = vmatpush3.bf16.msra.mxu1 %v2056_v25 }
 0x23c   :  { %699 = vmatprep.subr.bf16.mxu0 %v2008_v9  ;;  %1626 = vmatprep.subr.bf16.mxu1 %v1937_v13 }
 0x23f   :  { %700 = vmatpush1.bf16.msra.mxu0 %v2015_v12  ;;  %1627 = vmatpush3.bf16.msra.mxu1 %v2066_v27 }
 0x240   :  { %701 = vmatprep.subr.bf16.mxu0 %v2023_v15  ;;  %1628 = vmatprep.subr.bf16.mxu1 %v1937_v13 }
 0x243   :  { %702 = vmatpush1.bf16.msra.mxu0 %v2030_v17  ;;  %1629 = vmatpush3.bf16.msra.mxu1 %v2072_v28 }
 0x244   :  { %703 = vmatprep.subr.bf16.mxu0 %v2034_v18  ;;  %1630 = vmatprep.subr.bf16.mxu1 %v1937_v13 }
 0x247   :  { %704 = vmatpush1.bf16.msra.mxu0 %v2039_v20  ;;  %1631 = vmatpush3.bf16.msra.mxu1 %v2080_v29 }
 0x248   :  { %705 = vmatprep.subr.bf16.mxu0 %v2042_v21  ;;  %1632 = vmatprep.subr.bf16.mxu1 %v1937_v13 }
 0x24b   :  { %706 = vmatpush1.bf16.msra.mxu0 %v2050_v23  ;;  %1633 = vmatpush3.bf16.msra.mxu1 %v2086_v30 }
 0x24c   :  { %707 = vmatprep.subr.bf16.mxu0 %v2052_v24  ;;  %1634 = vmatprep.subr.bf16.mxu1 %v1937_v13 }
 0x24f   :  { %708 = vmatpush1.bf16.msra.mxu0 %v2059_v26  ;;  %1635 = vmatpush3.bf16.msra.mxu1 %v2092_v31 }
 0x250   :  { %814 = vmatprep.subr.bf16.mxu0 %v1985_v1  ;;  %1640 = vmatprep.subr.bf16.mxu1 %v1937_v13 }
 0x2f2   :  { %v606_v43 = vpop.f32.mrf.mxu0  ;;  %v647_v48 = vpop.f32.mrf.mxu1 }
 0x2f3   :  { %v655_v49 = vrot.slane %v606_v43, 4  ;;  %v673_v10 = vadd.f32 %v2144_v14, %v647_v48 }
 0x2f4   :  { %v608_v51 = vpop.f32.mrf.mxu0  ;;  %v1618_v53 = vpop.f32.mrf.mxu1 }
 0x2f5   :  { %v659_v54 = vadd.f32 %v655_v49, %v2135_v52  ;;  %v656_v61 = vrot.slane %v608_v51, 4  ;;  %v675_v11 = vrot.slane %v673_v10, 4 }
 0x2f6   :  { %v610_v55 = vpop.f32.mrf.mxu0  ;;  %v650_v56 = vpop.f32.mrf.mxu1 }
 0x2f7   :  { %v1450_v57 = vmul.f32 -1.442695, %v659_v54  ;;  %v660_v62 = vadd.f32 %v656_v61, %v2138_v59 }
 0x2f8   :  { %v611_v58 = vpop.f32.mrf.mxu0  ;;  %v1619_v60 = vpop.f32.mrf.mxu1 }
 0x2f9   :  { %1812 = vpow2.f32 %v1450_v57  ;;  %v1451_v7 = vmul.f32 -1.442695, %v660_v62 }
 0x306   :  { %v1813_v63 = vpop.eup %1812 }
 0x307   :  { %v667_v6 = vadd.f32 1.0, %v1813_v63 }
 0x309   :  { %1814 = vrcp.f32 %v667_v6 }
 0x30a   :  { %1816 = vpow2.f32 %v1451_v7 }
 0x316   :  { %v1815_v16 = vpop.eup %1814 }
 0x317   :  { %v677_v32 = vmul.f32 %v1815_v16, %v675_v11  ;;  %v1817_v35 = vpop.eup %1816 }
 0x318   :  { %v668_v36 = vadd.f32 1.0, %v1817_v35 }
 0x319   :  { %v678_v33 = vadd.f32 %v677_v32, %v2147_v34 }
 0x31b   :  { %1818 = vtanh.f32 %v678_v33 }
 0x31c   :  { %1820 = vrcp.f32 %v668_v36 }
 0x328   :  { %v1819_v37 = vpop.eup %1818 }
 0x329   :  { %v681_v38 = vrot.slane %v1819_v37, 2  ;;  %v1821_v41 = vpop.eup %1820 }
 0x32b   :  { %v683_v39 = vsub.f32 %v2194_v44, %v681_v38 }
 0x32d   :  { %v685_v40 = vrot.slane %v683_v39, 6 }
 0x32f   :  { %v687_v46 = vmul.f32 %v1821_v41, %v685_v40 }
 0x331   :  { %v2238_v47 = vadd.f32 %v1819_v37, %v687_v46 }
 0x333   :  { %v689_v43 = vpack.c.bf16 %v2238_v47, %v2238_v47 }
 0x335   :  { %v691_v48 = vrot.slane %v689_v43, 2 }
 0x337   :  { %726 = vmatmul.mubr.bf16.vlgmr.msra.gmra.mxu0 %v691_v48  ;;  %1637 = vmatmul.mubr.bf16.vlgmr.msra.gmra.mxu1 %v691_v48 }
 0x338   :  { %815 = vmatpush1.bf16.msra.mxu0 %v1987_v2  ;;  %1641 = vmatpush3.bf16.msra.mxu1 %v2036_v19 }
 0x339   :  { %816 = vmatprep.subr.bf16.mxu0 %v1990_v3  ;;  %1642 = vmatprep.subr.bf16.mxu1 %v1937_v13 }
 0x33a   :  { %846 = vmatprep.mubr.bf16.mxu0 %v1936_v0  ;;  %1656 = vmatprep.mubr.msk.bf16.mxu1 %vm1938_vm2, %v1937_v13 }
 0x33c   :  { %817 = vmatpush1.bf16.msra.mxu0 %v1993_v4  ;;  %1643 = vmatpush3.bf16.msra.mxu1 %v2046_v22 }
 0x33d   :  { %818 = vmatprep.subr.bf16.mxu0 %v1996_v5  ;;  %1644 = vmatprep.subr.bf16.mxu1 %v1937_v13 }
 0x340   :  { %819 = vmatpush1.bf16.msra.mxu0 %v2005_v8  ;;  %1645 = vmatpush3.bf16.msra.mxu1 %v2056_v25 }
 0x341   :  { %820 = vmatprep.subr.bf16.mxu0 %v2008_v9  ;;  %1646 = vmatprep.subr.bf16.mxu1 %v1937_v13 }
 0x344   :  { %821 = vmatpush1.bf16.msra.mxu0 %v2015_v12  ;;  %1647 = vmatpush3.bf16.msra.mxu1 %v2066_v27 }
 0x345   :  { %822 = vmatprep.subr.bf16.mxu0 %v2023_v15  ;;  %1648 = vmatprep.subr.bf16.mxu1 %v1937_v13 }
 0x348   :  { %823 = vmatpush1.bf16.msra.mxu0 %v2030_v17  ;;  %1649 = vmatpush3.bf16.msra.mxu1 %v2072_v28 }
 0x349   :  { %824 = vmatprep.subr.bf16.mxu0 %v2034_v18  ;;  %1650 = vmatprep.subr.bf16.mxu1 %v1937_v13 }
 0x34c   :  { %825 = vmatpush1.bf16.msra.mxu0 %v2039_v20  ;;  %1651 = vmatpush3.bf16.msra.mxu1 %v2080_v29 }
 0x34d   :  { %826 = vmatprep.subr.bf16.mxu0 %v2042_v21  ;;  %1652 = vmatprep.subr.bf16.mxu1 %v1937_v13 }
 0x350   :  { %827 = vmatpush1.bf16.msra.mxu0 %v2050_v23  ;;  %1653 = vmatpush3.bf16.msra.mxu1 %v2086_v30 }
 0x351   :  { %828 = vmatprep.subr.bf16.mxu0 %v2052_v24  ;;  %1654 = vmatprep.subr.bf16.mxu1 %v1937_v13 }
 0x354   :  { %829 = vmatpush1.bf16.msra.mxu0 %v2059_v26  ;;  %1655 = vmatpush3.bf16.msra.mxu1 %v2092_v31 }
 0x355   :  { %923 = vmatprep.subr.bf16.mxu0 %v1985_v1  ;;  %1660 = vmatprep.subr.bf16.mxu1 %v1937_v13 }
 0x3f7   :  { %v727_v44 = vpop.f32.mrf.mxu0  ;;  %v768_v49 = vpop.f32.mrf.mxu1 }
 0x3f8   :  { %v776_v51 = vrot.slane %v727_v44, 2  ;;  %v794_v11 = vadd.f32 %v2144_v14, %v768_v49 }
 0x3f9   :  { %v729_v53 = vpop.f32.mrf.mxu0  ;;  %v1638_v54 = vpop.f32.mrf.mxu1 }
 0x3fa   :  { %v780_v55 = vadd.f32 %v776_v51, %v2135_v52  ;;  %v777_v62 = vrot.slane %v729_v53, 2  ;;  %v796_v16 = vrot.slane %v794_v11, 2 }
 0x3fb   :  { %v731_v56 = vpop.f32.mrf.mxu0  ;;  %v771_v57 = vpop.f32.mrf.mxu1 }
 0x3fc   :  { %v1452_v58 = vmul.f32 -1.442695, %v780_v55  ;;  %v781_v63 = vadd.f32 %v777_v62, %v2138_v59 }
 0x3fd   :  { %v732_v60 = vpop.f32.mrf.mxu0  ;;  %v1639_v61 = vpop.f32.mrf.mxu1 }
 0x3fe   :  { %1822 = vpow2.f32 %v1452_v58  ;;  %v1453_v10 = vmul.f32 -1.442695, %v781_v63 }
 0x40b   :  { %v1823_v6 = vpop.eup %1822 }
 0x40c   :  { %v788_v7 = vadd.f32 1.0, %v1823_v6 }
 0x40e   :  { %1824 = vrcp.f32 %v788_v7 }
 0x40f   :  { %1826 = vpow2.f32 %v1453_v10 }
 0x41b   :  { %v1825_v32 = vpop.eup %1824 }
 0x41c   :  { %v798_v33 = vmul.f32 %v1825_v32, %v796_v16  ;;  %v1827_v35 = vpop.eup %1826 }
 0x41d   :  { %v789_v36 = vadd.f32 1.0, %v1827_v35 }
 0x41e   :  { %v799_v52 = vadd.f32 %v798_v33, %v2147_v34 }
 0x420   :  { %1828 = vtanh.f32 %v799_v52 }
 0x421   :  { %1830 = vrcp.f32 %v789_v36 }
 0x42d   :  { %v1829_v37 = vpop.eup %1828 }
 0x42e   :  { %v802_v38 = vrot.slane %v1829_v37, 2  ;;  %v1831_v40 = vpop.eup %1830 }
 0x430   :  { %v804_v59 = vsub.f32 %v2238_v47, %v802_v38 }
 0x432   :  { %v806_v39 = vrot.slane %v804_v59, 6 }
 0x434   :  { %v808_v41 = vmul.f32 %v1831_v40, %v806_v39 }
 0x436   :  { %v2282_v46 = vadd.f32 %v1829_v37, %v808_v41 }
 0x438   :  { %v810_v43 = vpack.c.bf16 %v2282_v46, %v2282_v46 }
 0x43a   :  { %v812_v48 = vrot.slane %v810_v43, 3 }
 0x43c   :  { %847 = vmatmul.mubr.bf16.vlgmr.msra.gmra.mxu0 %v812_v48  ;;  %1657 = vmatmul.mubr.bf16.vlgmr.msra.gmra.mxu1 %v812_v48 }
 0x43d   :  { %924 = vmatpush1.bf16.msra.mxu0 %v1987_v2  ;;  %1661 = vmatpush3.bf16.msra.mxu1 %v2036_v19 }
 0x43e   :  { %925 = vmatprep.subr.bf16.mxu0 %v1990_v3  ;;  %1662 = vmatprep.subr.bf16.mxu1 %v1937_v13 }
 0x43f   :  { %955 = vmatprep.mubr.bf16.mxu0 %v1936_v0  ;;  %1676 = vmatprep.mubr.msk.bf16.mxu1 %vm1938_vm2, %v1937_v13 }
 0x441   :  { %926 = vmatpush1.bf16.msra.mxu0 %v1993_v4  ;;  %1663 = vmatpush3.bf16.msra.mxu1 %v2046_v22 }
 0x442   :  { %927 = vmatprep.subr.bf16.mxu0 %v1996_v5  ;;  %1664 = vmatprep.subr.bf16.mxu1 %v1937_v13 }
 0x445   :  { %928 = vmatpush1.bf16.msra.mxu0 %v2005_v8  ;;  %1665 = vmatpush3.bf16.msra.mxu1 %v2056_v25 }
 0x446   :  { %929 = vmatprep.subr.bf16.mxu0 %v2008_v9  ;;  %1666 = vmatprep.subr.bf16.mxu1 %v1937_v13 }
 0x449   :  { %930 = vmatpush1.bf16.msra.mxu0 %v2015_v12  ;;  %1667 = vmatpush3.bf16.msra.mxu1 %v2066_v27 }
 0x44a   :  { %931 = vmatprep.subr.bf16.mxu0 %v2023_v15  ;;  %1668 = vmatprep.subr.bf16.mxu1 %v1937_v13 }
 0x44d   :  { %932 = vmatpush1.bf16.msra.mxu0 %v2030_v17  ;;  %1669 = vmatpush3.bf16.msra.mxu1 %v2072_v28 }
 0x44e   :  { %933 = vmatprep.subr.bf16.mxu0 %v2034_v18  ;;  %1670 = vmatprep.subr.bf16.mxu1 %v1937_v13 }
 0x451   :  { %934 = vmatpush1.bf16.msra.mxu0 %v2039_v20  ;;  %1671 = vmatpush3.bf16.msra.mxu1 %v2080_v29 }
 0x452   :  { %935 = vmatprep.subr.bf16.mxu0 %v2042_v21  ;;  %1672 = vmatprep.subr.bf16.mxu1 %v1937_v13 }
 0x455   :  { %936 = vmatpush1.bf16.msra.mxu0 %v2050_v23  ;;  %1673 = vmatpush3.bf16.msra.mxu1 %v2086_v30 }
 0x456   :  { %937 = vmatprep.subr.bf16.mxu0 %v2052_v24  ;;  %1674 = vmatprep.subr.bf16.mxu1 %v1937_v13 }
 0x459   :  { %938 = vmatpush1.bf16.msra.mxu0 %v2059_v26  ;;  %1675 = vmatpush3.bf16.msra.mxu1 %v2092_v31 }
 0x45a   :  { %1044 = vmatprep.subr.bf16.mxu0 %v1985_v1  ;;  %1680 = vmatprep.subr.bf16.mxu1 %v1937_v13 }
 0x4fc   :  { %v848_v34 = vpop.f32.mrf.mxu0  ;;  %v889_v47 = vpop.f32.mrf.mxu1 }
 0x4fd   :  { %v895_v44 = vadd.f32 %v848_v34, %v2129_v42  ;;  %v909_v62 = vadd.f32 %v2144_v14, %v889_v47 }
 0x4fe   :  { %v850_v49 = vpop.f32.mrf.mxu0  ;;  %v1658_v51 = vpop.f32.mrf.mxu1 }
 0x4ff   :  { %v1454_v53 = vmul.f32 -1.442695, %v895_v44  ;;  %v896_v58 = vadd.f32 %v850_v49, %v2131_v45 }
 0x500   :  { %v852_v54 = vpop.f32.mrf.mxu0  ;;  %v892_v55 = vpop.f32.mrf.mxu1 }
 0x501   :  { %1832 = vpow2.f32 %v1454_v53  ;;  %v1455_v1 = vmul.f32 -1.442695, %v896_v58  ;;  %v1873_v58 = vld [vmem:[#allocation2 + $0xa8] ss:$12 sps:$4 sm:$0xff]  }
 0x502   :  { %v853_v56 = vpop.f32.mrf.mxu0  ;;  %v1659_v57 = vpop.f32.mrf.mxu1 }
 0x50e   :  { %v1833_v60 = vpop.eup %1832 }
 0x50f   :  { %v903_v61 = vadd.f32 1.0, %v1833_v60  ;;  %v1874_v60 = vld [vmem:[#allocation2 + $0xb0] ss:$12 sps:$4 sm:$0xff]  }
 0x511   :  { %1834 = vrcp.f32 %v903_v61  ;;  %v1875_v61 = vld [vmem:[#allocation2 + $0x94] ss:$12 sps:$4 sm:$0xff]  }
 0x512   :  { %1836 = vpow2.f32 %v1455_v1  ;;  %v1876_v1 = vld [vmem:[#allocation2 + $0x90] ss:$12 sps:$4 sm:$0xff]  }
 0x51e   :  { %v1835_v63 = vpop.eup %1834 }
 0x51f   :  { %v910_v6 = vmul.f32 %v1835_v63, %v909_v62  ;;  %v1837_v10 = vpop.eup %1836  ;;  %v1877_v62 = vld [vmem:[#allocation2 + $0x7c] ss:$12 sps:$4 sm:$0xff]   ;;  %v1878_v63 = vld [vmem:[#allocation2 + $0x78] ss:$12 sps:$4 sm:$0xff]  }
 0x520   :  { %v904_v11 = vadd.f32 1.0, %v1837_v10  ;;  %v1883_v10 = vld [vmem:[#allocation2 + $0x34] ss:$12 sps:$4 sm:$0xff]  }
 0x521   :  { %v911_v7 = vadd.f32 %v910_v6, %v2133_v50  ;;  %v1879_v6 = vld [vmem:[#allocation2 + $0x64] ss:$12 sps:$4 sm:$0xff]  }
 0x523   :  { %1838 = vtanh.f32 %v911_v7  ;;  %v1881_v7 = vld [vmem:[#allocation2 + $0x4c] ss:$12 sps:$4 sm:$0xff]  }
 0x524   :  { %1840 = vrcp.f32 %v904_v11  ;;  %v1885_v11 = vld [vmem:[#allocation2 + $0x1c] ss:$12 sps:$4 sm:$0xff]  }
 0x530   :  { %v1839_v16 = vpop.eup %1838 }
 0x531   :  { %v914_v32 = vrot.slane %v1839_v16, 2  ;;  %v1841_v35 = vpop.eup %1840 }
 0x533   :  { %v916_v33 = vsub.f32 %v2282_v46, %v914_v32 }
 0x535   :  { %v918_v52 = vrot.slane %v916_v33, 6 }
 0x537   :  { %v920_v36 = vmul.f32 %v1841_v35, %v918_v52 }
 0x539   :  { %v2326_v37 = vadd.f32 %v1839_v16, %v920_v36  ;;  %v1887_v16 = vld [vmem:[#allocation2 + $0x4] ss:$12 sps:$4 sm:$0xff]  }
 0x53b   :  { %v922_v38 = vpack.c.bf16 %v2326_v37, %v2326_v37 }
 0x53d   :  { %956 = vmatmul.mubr.bf16.vlgmr.msra.gmra.mxu0 %v922_v38  ;;  %1677 = vmatmul.mubr.bf16.vlgmr.msra.gmra.mxu1 %v922_v38 }
 0x53e   :  { %1045 = vmatpush1.bf16.msra.mxu0 %v1987_v2  ;;  %1681 = vmatpush3.bf16.msra.mxu1 %v2036_v19  ;;  %v1872_v2 = vld [vmem:[#allocation2 + $0xac] ss:$12 sps:$4 sm:$0xff]  }
 0x53f   :  { %1046 = vmatprep.subr.bf16.mxu0 %v1990_v3  ;;  %1682 = vmatprep.subr.bf16.mxu1 %v1937_v13 }
 0x540   :  { %1076 = vmatprep.mubr.bf16.mxu0 %v1936_v0  ;;  %1696 = vmatprep.mubr.msk.bf16.mxu1 %vm1938_vm2, %v1937_v13 }
 0x542   :  { %1047 = vmatpush1.bf16.msra.mxu0 %v1993_v4  ;;  %1683 = vmatpush3.bf16.msra.mxu1 %v2046_v22 }
 0x543   :  { %1048 = vmatprep.subr.bf16.mxu0 %v1996_v5  ;;  %1684 = vmatprep.subr.bf16.mxu1 %v1937_v13 }
 0x546   :  { %1049 = vmatpush1.bf16.msra.mxu0 %v2005_v8  ;;  %1685 = vmatpush3.bf16.msra.mxu1 %v2056_v25 }
 0x547   :  { %1050 = vmatprep.subr.bf16.mxu0 %v2008_v9  ;;  %1686 = vmatprep.subr.bf16.mxu1 %v1937_v13 }
 0x54a   :  { %1051 = vmatpush1.bf16.msra.mxu0 %v2015_v12  ;;  %1687 = vmatpush3.bf16.msra.mxu1 %v2066_v27 }
 0x54b   :  { %1052 = vmatprep.subr.bf16.mxu0 %v2023_v15  ;;  %1688 = vmatprep.subr.bf16.mxu1 %v1937_v13 }
 0x54e   :  { %1053 = vmatpush1.bf16.msra.mxu0 %v2030_v17  ;;  %1689 = vmatpush3.bf16.msra.mxu1 %v2072_v28 }
 0x54f   :  { %1054 = vmatprep.subr.bf16.mxu0 %v2034_v18  ;;  %1690 = vmatprep.subr.bf16.mxu1 %v1937_v13 }
 0x552   :  { %1055 = vmatpush1.bf16.msra.mxu0 %v2039_v20  ;;  %1691 = vmatpush3.bf16.msra.mxu1 %v2080_v29 }
 0x553   :  { %1056 = vmatprep.subr.bf16.mxu0 %v2042_v21  ;;  %1692 = vmatprep.subr.bf16.mxu1 %v1937_v13 }
 0x556   :  { %1057 = vmatpush1.bf16.msra.mxu0 %v2050_v23  ;;  %1693 = vmatpush3.bf16.msra.mxu1 %v2086_v30 }
 0x557   :  { %1058 = vmatprep.subr.bf16.mxu0 %v2052_v24  ;;  %1694 = vmatprep.subr.bf16.mxu1 %v1937_v13 }
 0x55a   :  { %1059 = vmatpush1.bf16.msra.mxu0 %v2059_v26  ;;  %1695 = vmatpush3.bf16.msra.mxu1 %v2092_v31 }
 0x55b   :  { %1165 = vmatprep.subr.bf16.mxu0 %v1872_v2  ;;  %1700 = vmatprep.subr.bf16.mxu1 %v1937_v13 }
 0x5fd   :  { %v957_v3 = vpop.f32.mrf.mxu0  ;;  %v998_v4 = vpop.f32.mrf.mxu1 }
 0x5fe   :  { %v1006_v5 = vrot.slane %v957_v3, 6  ;;  %v1024_v39 = vadd.f32 %v2144_v14, %v998_v4 }
 0x5ff   :  { %v959_v8 = vpop.f32.mrf.mxu0  ;;  %v1678_v9 = vpop.f32.mrf.mxu1 }
 0x600   :  { %v1010_v12 = vadd.f32 %v1006_v5, %v2129_v42  ;;  %v1007_v21 = vrot.slane %v959_v8, 6  ;;  %v1026_v40 = vrot.slane %v1024_v39, 6 }
 0x601   :  { %v961_v15 = vpop.f32.mrf.mxu0  ;;  %v1001_v17 = vpop.f32.mrf.mxu1 }
 0x602   :  { %v1456_v18 = vmul.f32 -1.442695, %v1010_v12  ;;  %v1011_v23 = vadd.f32 %v1007_v21, %v2131_v45 }
 0x603   :  { %v962_v19 = vpop.f32.mrf.mxu0  ;;  %v1679_v20 = vpop.f32.mrf.mxu1 }
 0x604   :  { %1842 = vpow2.f32 %v1456_v18  ;;  %v1457_v59 = vmul.f32 -1.442695, %v1011_v23 }
 0x611   :  { %v1843_v24 = vpop.eup %1842 }
 0x612   :  { %v1018_v26 = vadd.f32 1.0, %v1843_v24 }
 0x614   :  { %1844 = vrcp.f32 %v1018_v26 }
 0x615   :  { %1846 = vpow2.f32 %v1457_v59 }
 0x621   :  { %v1845_v41 = vpop.eup %1844 }
 0x622   :  { %v1028_v46 = vmul.f32 %v1845_v41, %v1026_v40  ;;  %v1847_v48 = vpop.eup %1846 }
 0x623   :  { %v1019_v34 = vadd.f32 1.0, %v1847_v48  ;;  %v1784_v48 = vld [vmem:[%s2444_s5 + $0x38] sm:$0xff]  }
 0x624   :  { %v1029_v43 = vadd.f32 %v1028_v46, %v2133_v50 }
 0x626   :  { %1848 = vtanh.f32 %v1029_v43 }
 0x627   :  { %1850 = vrcp.f32 %v1019_v34  ;;  %v1785_v34 = vld [vmem:[%s2444_s5 + $0x30] sm:$0xff]  }
 0x633   :  { %v1849_v47 = vpop.eup %1848 }
 0x634   :  { %v1032_v44 = vrot.slane %v1849_v47, 2  ;;  %v1851_v53 = vpop.eup %1850 }
 0x636   :  { %v1034_v49 = vsub.f32 %v2326_v37, %v1032_v44  ;;  %v1787_v44 = vld [vmem:[%s2444_s5 + $0x20] sm:$0xff]  }
 0x638   :  { %v1036_v51 = vrot.slane %v1034_v49, 6  ;;  %v1788_v49 = vld [vmem:[%s2444_s5 + $0x18] sm:$0xff]  }
 0x63a   :  { %v1038_v54 = vmul.f32 %v1851_v53, %v1036_v51  ;;  %v1789_v51 = vld [vmem:[%s2444_s5 + $0x10] sm:$0xff]   ;;  %v1790_v53 = vld [vmem:[%s2444_s5 + $0x8] sm:$0xff]  }
 0x63c   :  { %v2369_v55 = vadd.f32 %v1849_v47, %v1038_v54  ;;  %v1786_v47 = vld [vmem:[%s2444_s5 + $0x28] sm:$0xff]   ;;  %v1791_v54 = vld [vmem:[%s2444_s5] sm:$0xff]  }
 0x63e   :  { %v1040_v56 = vpack.c.bf16 %v2369_v55, %v2369_v55 }
 0x640   :  { %v1042_v57 = vrot.slane %v1040_v56, 1 }
 0x642   :  { %1077 = vmatmul.mubr.bf16.vlgmr.msra.gmra.mxu0 %v1042_v57  ;;  %1697 = vmatmul.mubr.bf16.vlgmr.msra.gmra.mxu1 %v1042_v57 }
 0x643   :  { %1166 = vmatpush1.bf16.msra.mxu0 %v1873_v58  ;;  %1701 = vmatpush3.bf16.msra.mxu1 %v1874_v60 }
 0x644   :  { %1167 = vmatprep.subr.bf16.mxu0 %v1875_v61  ;;  %1702 = vmatprep.subr.bf16.mxu1 %v1937_v13 }
 0x645   :  { %1197 = vmatprep.mubr.bf16.mxu0 %v1936_v0  ;;  %1716 = vmatprep.mubr.msk.bf16.mxu1 %vm1938_vm2, %v1937_v13  ;;  %v1880_v0 = vld [vmem:[#allocation2 + $0x60] ss:$12 sps:$4 sm:$0xff]  }
 0x647   :  { %1168 = vmatpush1.bf16.msra.mxu0 %v1876_v1  ;;  %1703 = vmatpush3.bf16.msra.mxu1 %v2046_v22  ;;  %v1882_v22 = vld [vmem:[#allocation2 + $0x48] ss:$12 sps:$4 sm:$0xff]  }
 0x648   :  { %1169 = vmatprep.subr.bf16.mxu0 %v1877_v62  ;;  %1704 = vmatprep.subr.bf16.mxu1 %v1937_v13 }
 0x64b   :  { %1170 = vmatpush1.bf16.msra.mxu0 %v1878_v63  ;;  %1705 = vmatpush3.bf16.msra.mxu1 %v2056_v25  ;;  %v1884_v25 = vld [vmem:[#allocation2 + $0x30] ss:$12 sps:$4 sm:$0xff]  }
 0x64c   :  { %1171 = vmatprep.subr.bf16.mxu0 %v1879_v6  ;;  %1706 = vmatprep.subr.bf16.mxu1 %v1937_v13 }
 0x64f   :  { %1172 = vmatpush1.bf16.msra.mxu0 %v1880_v0  ;;  %1707 = vmatpush3.bf16.msra.mxu1 %v2066_v27  ;;  %v1886_v27 = vld [vmem:[#allocation2 + $0x18] ss:$12 sps:$4 sm:$0xff]  }
 0x650   :  { %1173 = vmatprep.subr.bf16.mxu0 %v1881_v7  ;;  %1708 = vmatprep.subr.bf16.mxu1 %v1937_v13 }
 0x653   :  { %1174 = vmatpush1.bf16.msra.mxu0 %v1882_v22  ;;  %1709 = vmatpush3.bf16.msra.mxu1 %v2072_v28  ;;  %v1888_v28 = vld [vmem:[#allocation2] ss:$12 sps:$4 sm:$0xff]  }
 0x654   :  { %1175 = vmatprep.subr.bf16.mxu0 %v1883_v10  ;;  %1710 = vmatprep.subr.bf16.mxu1 %v1937_v13 }
 0x657   :  { %1176 = vmatpush1.bf16.msra.mxu0 %v1884_v25  ;;  %1711 = vmatpush3.bf16.msra.mxu1 %v2080_v29 }
 0x658   :  { %1177 = vmatprep.subr.bf16.mxu0 %v1885_v11  ;;  %1712 = vmatprep.subr.bf16.mxu1 %v1937_v13 }
 0x65b   :  { %1178 = vmatpush1.bf16.msra.mxu0 %v1886_v27  ;;  %1713 = vmatpush3.bf16.msra.mxu1 %v2086_v30 }
 0x65c   :  { %1179 = vmatprep.subr.bf16.mxu0 %v1887_v16  ;;  %1714 = vmatprep.subr.bf16.mxu1 %v1937_v13 }
 0x65f   :  { %1180 = vmatpush1.bf16.msra.mxu0 %v1888_v28  ;;  %1715 = vmatpush3.bf16.msra.mxu1 %v2092_v31 }
 0x660   :  { %1720 = vmatprep.subr.bf16.mxu0 %v1937_v13 }
 0x702   :  { %v1078_v32 = vpop.f32.mrf.mxu0  ;;  %v1119_v29 = vpop.f32.mrf.mxu1 }
 0x703   :  { %v1127_v33 = vrot.slane %v1078_v32, 4  ;;  %v1145_v12 = vadd.f32 %v2144_v14, %v1119_v29 }
 0x704   :  { %v1080_v52 = vpop.f32.mrf.mxu0  ;;  %v1698_v35 = vpop.f32.mrf.mxu1 }
 0x705   :  { %v1131_v36 = vadd.f32 %v1127_v33, %v2129_v42  ;;  %v1128_v4 = vrot.slane %v1080_v52, 4  ;;  %v1147_v15 = vrot.slane %v1145_v12, 4 }
 0x706   :  { %v1082_v37 = vpop.f32.mrf.mxu0  ;;  %v1122_v38 = vpop.f32.mrf.mxu1 }
 0x707   :  { %v1458_v30 = vmul.f32 -1.442695, %v1131_v36  ;;  %v1132_v5 = vadd.f32 %v1128_v4, %v2131_v45 }
 0x708   :  { %v1083_v2 = vpop.f32.mrf.mxu0  ;;  %v1699_v3 = vpop.f32.mrf.mxu1 }
 0x709   :  { %1852 = vpow2.f32 %v1458_v30  ;;  %v1459_v9 = vmul.f32 -1.442695, %v1132_v5 }
 0x716   :  { %v1853_v8 = vpop.eup %1852 }
 0x717   :  { %v1139_v31 = vadd.f32 1.0, %v1853_v8 }
 0x719   :  { %1854 = vrcp.f32 %v1139_v31 }
 0x71a   :  { %1856 = vpow2.f32 %v1459_v9 }
 0x726   :  { %v1855_v17 = vpop.eup %1854 }
 0x727   :  { %v1149_v18 = vmul.f32 %v1855_v17, %v1147_v15  ;;  %v1857_v20 = vpop.eup %1856 }
 0x728   :  { %v1140_v21 = vadd.f32 1.0, %v1857_v20 }
 0x729   :  { %v1150_v19 = vadd.f32 %v1149_v18, %v2133_v50 }
 0x72b   :  { %1858 = vtanh.f32 %v1150_v19 }
 0x72c   :  { %1860 = vrcp.f32 %v1140_v21 }
 0x738   :  { %v1859_v23 = vpop.eup %1858 }
 0x739   :  { %v1153_v24 = vrot.slane %v1859_v23, 2  ;;  %v1861_v39 = vpop.eup %1860 }
 0x73b   :  { %v1155_v26 = vsub.f32 %v2369_v55, %v1153_v24 }
 0x73d   :  { %v1157_v59 = vrot.slane %v1155_v26, 6 }
 0x73f   :  { %v1159_v40 = vmul.f32 %v1861_v39, %v1157_v59 }
 0x741   :  { %v1160_v41 = vadd.f32 %v1859_v23, %v1159_v40 }
 0x743   :  { %v1161_v46 = vpack.c.bf16 %v1160_v41, %v1160_v41 }
 0x745   :  { %v1163_v43 = vrot.slane %v1161_v46, 2 }
 0x747   :  { %1198 = vmatmul.mubr.bf16.vlgmr.msra.gmra.mxu0 %v1163_v43  ;;  %1717 = vmatmul.mubr.bf16.vlgmr.msra.gmra.mxu1 %v1163_v43 }
 0x748   :  { %1736 = vmatprep.mubr.msk.bf16.mxu0 %vm1938_vm2, %v1937_v13  ;;  %1721 = vmatpush3.bf16.msra.mxu0 %v1784_v48 }
 0x749   :  { %1722 = vmatprep.subr.bf16.mxu0 %v1937_v13 }
 0x74c   :  { %1723 = vmatpush3.bf16.msra.mxu0 %v1785_v34 }
 0x74d   :  { %1724 = vmatprep.subr.bf16.mxu0 %v1937_v13 }
 0x750   :  { %1725 = vmatpush3.bf16.msra.mxu0 %v1786_v47 }
 0x751   :  { %1726 = vmatprep.subr.bf16.mxu0 %v1937_v13 }
 0x754   :  { %1727 = vmatpush3.bf16.msra.mxu0 %v1787_v44 }
 0x755   :  { %1728 = vmatprep.subr.bf16.mxu0 %v1937_v13 }
 0x758   :  { %1729 = vmatpush3.bf16.msra.mxu0 %v1788_v49 }
 0x759   :  { %1730 = vmatprep.subr.bf16.mxu0 %v1937_v13 }
 0x75c   :  { %1731 = vmatpush3.bf16.msra.mxu0 %v1789_v51 }
 0x75d   :  { %1732 = vmatprep.subr.bf16.mxu0 %v1937_v13 }
 0x760   :  { %1733 = vmatpush3.bf16.msra.mxu0 %v1790_v53 }
 0x761   :  { %1734 = vmatprep.subr.bf16.mxu0 %v1937_v13 }
 0x764   :  { %1735 = vmatpush3.bf16.msra.mxu0 %v1791_v54 }
 0x807   :  { %v1199_v55 = vpop.f32.mrf.mxu0  ;;  %v1240_v56 = vpop.f32.mrf.mxu1 }
 0x808   :  { %v1248_v57 = vrot.slane %v1199_v55, 2  ;;  %v1266_v11 = vadd.f32 %v2144_v14, %v1240_v56  ;;  %v1462_v14 = vld [vmem:[%s2445_s6] ss:$0 sm:$0xff] }
 0x809   :  { %v1201_v58 = vpop.f32.mrf.mxu0  ;;  %v1718_v60 = vpop.f32.mrf.mxu1 }
 0x80a   :  { %v1252_v61 = vadd.f32 %v1248_v57, %v2129_v42  ;;  %v1249_v7 = vrot.slane %v1201_v58, 2  ;;  %v1268_v27 = vrot.slane %v1266_v11, 2 }
 0x80b   :  { %v1203_v1 = vpop.f32.mrf.mxu0  ;;  %v1243_v62 = vpop.f32.mrf.mxu1 }
 0x80c   :  { %v1460_v63 = vmul.f32 -1.442695, %v1252_v61  ;;  %v1253_v22 = vadd.f32 %v1249_v7, %v2131_v45 }
 0x80d   :  { %v1204_v6 = vpop.f32.mrf.mxu0  ;;  %v1719_v0 = vpop.f32.mrf.mxu1 }
 0x80e   :  { %1862 = vpow2.f32 %v1460_v63  ;;  %v1461_v13 = vmul.f32 -1.442695, %v1253_v22 }
 0x81b   :  { %v1863_v10 = vpop.eup %1862 }
 0x81c   :  { %v1260_v25 = vadd.f32 1.0, %v1863_v10 }
 0x81e   :  { %1864 = vrcp.f32 %v1260_v25 }
 0x81f   :  { %1866 = vpow2.f32 %v1461_v13 }
 0x82b   :  { %v1865_v16 = vpop.eup %1864 }
 0x82c   :  { %v1270_v28 = vmul.f32 %v1865_v16, %v1268_v27  ;;  %v1867_v32 = vpop.eup %1866 }
 0x82d   :  { %v1261_v29 = vadd.f32 1.0, %v1867_v32 }
 0x82e   :  { %v1271_v42 = vadd.f32 %v1270_v28, %v2133_v50 }
 0x830   :  { %1868 = vtanh.f32 %v1271_v42 }
 0x831   :  { %1870 = vrcp.f32 %v1261_v29 }
 0x83d   :  { %v1869_v33 = vpop.eup %1868 }
 0x83e   :  { %v1274_v52 = vrot.slane %v1869_v33, 2  ;;  %v1871_v36 = vpop.eup %1870 }
 0x840   :  { %v1276_v35 = vsub.f32 %v1160_v41, %v1274_v52 }
 0x842   :  { %v1278_v45 = vrot.slane %v1276_v35, 6 }
 0x844   :  { %v1280_v37 = vmul.f32 %v1871_v36, %v1278_v45 }
 0x846   :  { %v1281_v38 = vadd.f32 %v1869_v33, %v1280_v37 }
 0x848   :  { %v1282_v30 = vpack.c.bf16 %v1281_v38, %v1281_v38 }
 0x84a   :  { %v1307_v2 = vrot.slane %v1282_v30, 3 }
 0x84c   :  { %1737 = vmatmul.mubr.bf16.vlgmr.msra.gmra.mxu0 %v1307_v2 }
 0x90c   :  { %v1391_v50 = vpop.f32.mrf.mxu0 }
 0x90d   :  { %v1392_v3 = vadd.f32 %v1462_v14, %v1391_v50 }
 0x90e   :  { %v1738_v4 = vpop.f32.mrf.mxu0 }
 0x90f   :  { %1398 = vst.msk [vmem:[#allocation5] sm:$0x3] %vm1397_vm3, %v1392_v3 }
 0x910   :  { %v1394_v5 = vpop.f32.mrf.mxu0 }
 0x911   :  { %1920 = shalt.err (!%p1917_p9)
}
 0x912   :  { %1408 = dma.vmem_to_hbm [thread:$0]  %s1406_s9, 32, %s2446_s7, [#allocation4]   ;;  %v1739_v8 = vpop.f32.mrf.mxu0 }
 0x913   :  { %1931 = dma.done.wait [#allocation4], 32  }
 0x914   :  { %1932 = vsyncadd [#allocation4], 4294967264 }
 0x915   :  { %1412 = vsyncpa [#allocation3], 1 }
 0x916   :  { %1413 = vsyncpa [#allocation4], 1 }

</bundles_post_ra>
